<compile_context>
chip_gen: v7x
topology: tpu7x:2x2x1
jax: 0.10.0
libtpu: 0.0.40
codegen_flags: <defaults>
</compile_context>

<pallas_src>
import jax
import jax.numpy as jnp
from jax.experimental import pallas as pl
from jax.experimental.pallas import tpu as pltpu

EPS = 1e-7


def attention_kernel(x_ref, w_ref, b_ref, u_ref, out_ref, ait_ref):
    # x_ref:  (block_b, T, D)      w_ref: (D, A_pad)
    # b_ref:  (1, A_pad)           u_ref: (1, A_pad)   (zero-padded past A)
    # out_ref: (block_b, D)        ait_ref: (block_b, T)
    bblk, T, D = x_ref.shape
    x3 = x_ref[...]                                            # (bblk, T, D)

    # One big MXU matmul: (bblk*T, D) @ (D, A_pad).
    x2 = x3.reshape(bblk * T, D)
    uit = jnp.tanh(
        jnp.dot(x2, w_ref[...], preferred_element_type=jnp.float32)
        + b_ref[...]
    )                                                          # (bblk*T, A_pad)

    # ait logits: contraction over A (padded lanes multiply u == 0).
    uit3 = uit.reshape(bblk, T, -1)                            # (bblk, T, A_pad)
    logits = jnp.sum(uit3 * u_ref[...], axis=-1)               # (bblk, T)

    # exp-normalize per example (faithful to the module: no max-subtraction).
    e = jnp.exp(logits)                                        # (bblk, T)
    denom = jnp.sum(e, axis=-1, keepdims=True) + EPS           # (bblk, 1)
    inv = pl.reciprocal(denom, approx=True)                    # EUP slot
    inv = inv * (2.0 - denom * inv)                            # Newton step -> f32 accuracy
    ait = e * inv                                              # (bblk, T)
    ait_ref[...] = ait

    # Weighted sum over the sequence axis (cheap VPU/XLU work at these sizes).
    out_ref[...] = jnp.sum(x3 * ait[:, :, None], axis=1)       # (bblk, D)


def attention_layer(x, W, b, u, *, block_b=None):
    """x: (B, T, D) f32; W: (D, A); b: (A,); u: (A, 1).
    Returns (output (B, D), ait (B, T, 1)) — matches the PyTorch forward."""
    B, T, D = x.shape
    Din, A = W.shape
    assert Din == D

    # Rows per grid step ~256 (fills a 256-row MXU; 128+ already saturates v5e).
    if block_b is None:
        block_b = max(1, 256 // max(T, 1))
        block_b = max(8, (block_b // 8) * 8)   # multiple of 8 -> dense sublanes

    B_pad = int(pl.cdiv(B, block_b)) * block_b
    A_pad = int(pl.cdiv(A, 128)) * 128

    # Zero-pad: extra batch rows compute harmless finite values and are sliced
    # off; padded attention columns are killed by u_pad == 0.
    x_p = jnp.pad(x, ((0, B_pad - B), (0, 0), (0, 0))) if B_pad != B else x
    W_p = jnp.pad(W, ((0, 0), (0, A_pad - A)))
    b_p = jnp.pad(b, (0, A_pad - A)).reshape(1, A_pad)
    u_p = jnp.pad(u.reshape(-1), (0, A_pad - A)).reshape(1, A_pad)

    grid = (B_pad // block_b,)

    cost = pl.CostEstimate(
        flops=(2 * B_pad * T * D * A_pad        # x @ W
               + 2 * B_pad * T * A_pad          # uit . u
               + 2 * B_pad * T * D),            # weighted sum
        transcendentals=B_pad * T * (A_pad + 1),  # tanh + exp
        bytes_accessed=4 * (x_p.size + W_p.size + b_p.size + u_p.size
                            + B_pad * D + B_pad * T),
    )

    out_p, ait_p = pl.pallas_call(
        attention_kernel,
        out_shape=(
            jax.ShapeDtypeStruct((B_pad, D), jnp.float32),
            jax.ShapeDtypeStruct((B_pad, T), jnp.float32),
        ),
        grid_spec=pltpu.PrefetchScalarGridSpec(
            num_scalar_prefetch=0,
            grid=grid,
            in_specs=[
                pl.BlockSpec((block_b, T, D), lambda i: (i, 0, 0)),
                pl.BlockSpec((D, A_pad), lambda i: (0, 0)),
                pl.BlockSpec((1, A_pad), lambda i: (0, 0)),
                pl.BlockSpec((1, A_pad), lambda i: (0, 0)),
            ],
            out_specs=[
                pl.BlockSpec((block_b, D), lambda i: (i, 0)),
                pl.BlockSpec((block_b, T), lambda i: (i, 0)),
            ],
        ),
        compiler_params=pltpu.CompilerParams(
            dimension_semantics=("parallel",),
        ),
        cost_estimate=cost,
    )(x_p, W_p, b_p, u_p)

    return out_p[:B], ait_p[:B].reshape(B, T, 1)


def attention_layer_ref(x, W, b, u):
    """Plain-JAX reference mirroring the PyTorch forward exactly."""
    uit = jnp.tanh(jnp.matmul(x, W) + b)
    ait = jnp.squeeze(jnp.matmul(uit, u), -1)
    ait = jnp.exp(ait)
    ait = ait / (jnp.sum(ait, axis=1, keepdims=True) + EPS)
    ait = ait[..., None]
    weighted = x * ait
    return jnp.sum(weighted, axis=1), ait


if __name__ == "__main__":
    B, T, D, A = 2, 8, 128, 100  # input_last=128, attention_dim=100

    key = jax.random.PRNGKey(0)
    kx, kw, kb, ku = jax.random.split(key, 4)
    x = jax.random.normal(kx, (B, T, D), dtype=jnp.float32)
    W = jax.random.normal(kw, (D, A), dtype=jnp.float32)
    b = jax.random.normal(kb, (A,), dtype=jnp.float32)
    u = jax.random.normal(ku, (A, 1), dtype=jnp.float32)

    out, ait = attention_layer(x, W, b, u)
    out = jax.block_until_ready(out)
    ait = jax.block_until_ready(ait)

    out_ref, ait_ref = attention_layer_ref(x, W, b, u)
    assert out.shape == (B, D) and ait.shape == (B, T, 1)
    assert jnp.allclose(out, out_ref, atol=1e-4, rtol=1e-4)
    assert jnp.allclose(ait, ait_ref, atol=1e-5, rtol=1e-4)

    print("KERNEL_OK")
</pallas_src>

<mosaic_0001>
module attributes {stable_mosaic.version = 11 : i64} {
  func.func @attention_kernel(%arg0: i32, %arg1: memref<32x8x128xf32, #tpu.memory_space<vmem>>, %arg2: memref<128x128xf32, #tpu.memory_space<vmem>>, %arg3: memref<1x128xf32, #tpu.memory_space<vmem>>, %arg4: memref<1x128xf32, #tpu.memory_space<vmem>>, %arg5: memref<32x128xf32, #tpu.memory_space<vmem>>, %arg6: memref<32x8xf32, #tpu.memory_space<vmem>>) attributes {dimension_semantics = [#tpu.dimension_semantics<parallel>], iteration_bounds = array<i64: 1>, scalar_prefetch = 0 : i64, scratch_operands = 0 : i64, tpu.core_type = #tpu.core_type<tc>, window_params = [{transform_indices = @transform_0, window_bounds = array<i64: 32, 8, 128>}, {pipeline_mode = #tpu.pipeline_mode<synchronous>, transform_indices = @transform_1, window_bounds = array<i64: 128, 128>}, {pipeline_mode = #tpu.pipeline_mode<synchronous>, transform_indices = @transform_2, window_bounds = array<i64: 1, 128>}, {pipeline_mode = #tpu.pipeline_mode<synchronous>, transform_indices = @transform_3, window_bounds = array<i64: 1, 128>}, {transform_indices = @transform_4, window_bounds = array<i64: 32, 128>}, {transform_indices = @transform_5, window_bounds = array<i64: 32, 8>}]} {
    %c0 = arith.constant 0 : index
    %c0_0 = arith.constant 0 : index
    %c0_1 = arith.constant 0 : index
    %0 = vector.load %arg1[%c0, %c0_0, %c0_1] : memref<32x8x128xf32, #tpu.memory_space<vmem>>, vector<32x8x128xf32>
    %1 = vector.shape_cast %0 : vector<32x8x128xf32> to vector<256x128xf32>
    %c0_2 = arith.constant 0 : index
    %c0_3 = arith.constant 0 : index
    %2 = vector.load %arg2[%c0_2, %c0_3] : memref<128x128xf32, #tpu.memory_space<vmem>>, vector<128x128xf32>
    %cst = arith.constant dense<0.000000e+00> : vector<256x128xf32>
    %3 = tpu.matmul %1, %2, %cst {dimension_numbers = #tpu.dot_dimension_numbers<[1], [0], [0], [1], [0, 0, 1, 1], [], []>} : vector<256x128xf32>, vector<128x128xf32>, vector<256x128xf32> -> vector<256x128xf32>
    %c0_4 = arith.constant 0 : index
    %c0_5 = arith.constant 0 : index
    %4 = vector.load %arg3[%c0_4, %c0_5] : memref<1x128xf32, #tpu.memory_space<vmem>>, vector<1x128xf32>
    %5 = vector.broadcast %4 : vector<1x128xf32> to vector<256x128xf32>
    %6 = arith.addf %3, %5 : vector<256x128xf32>
    %7 = math.tanh %6 : vector<256x128xf32>
    %8 = vector.shape_cast %7 : vector<256x128xf32> to vector<32x8x128xf32>
    %c0_6 = arith.constant 0 : index
    %c0_7 = arith.constant 0 : index
    %9 = vector.load %arg4[%c0_6, %c0_7] : memref<1x128xf32, #tpu.memory_space<vmem>>, vector<1x128xf32>
    %10 = vector.shape_cast %9 : vector<1x128xf32> to vector<1x1x128xf32>
    %11 = vector.broadcast %10 : vector<1x1x128xf32> to vector<32x8x128xf32>
    %12 = arith.mulf %8, %11 : vector<32x8x128xf32>
    %cst_8 = arith.constant dense<0.000000e+00> : vector<32x8xf32>
    %13 = vector.multi_reduction <add>, %12, %cst_8 [2] : vector<32x8x128xf32> to vector<32x8xf32>
    %14 = math.exp %13 : vector<32x8xf32>
    %cst_9 = arith.constant dense<0.000000e+00> : vector<32xf32>
    %15 = vector.multi_reduction <add>, %14, %cst_9 [1] : vector<32x8xf32> to vector<32xf32>
    %16 = vector.shape_cast %15 : vector<32xf32> to vector<32x1xf32>
    %cst_10 = arith.constant 1.000000e-07 : f32
    %17 = vector.broadcast %cst_10 : f32 to vector<32x1xf32>
    %18 = arith.addf %16, %17 : vector<32x1xf32>
    %19 = tpu.reciprocal %18 {approx = true} : vector<32x1xf32> -> vector<32x1xf32>
    %20 = arith.mulf %18, %19 : vector<32x1xf32>
    %cst_11 = arith.constant 2.000000e+00 : f32
    %21 = vector.broadcast %cst_11 : f32 to vector<32x1xf32>
    %22 = arith.subf %21, %20 : vector<32x1xf32>
    %23 = arith.mulf %19, %22 : vector<32x1xf32>
    %24 = vector.broadcast %23 : vector<32x1xf32> to vector<32x8xf32>
    %25 = arith.mulf %14, %24 : vector<32x8xf32>
    %c0_12 = arith.constant 0 : index
    %c0_13 = arith.constant 0 : index
    %26 = vector.load %arg6[%c0_12, %c0_13] : memref<32x8xf32, #tpu.memory_space<vmem>>, vector<32x8xf32>
    tpu.vector_store %arg6[%c0_12, %c0_13], %25 {strides = array<i32>} : memref<32x8xf32, #tpu.memory_space<vmem>>, vector<32x8xf32>,
    %27 = vector.shape_cast %25 : vector<32x8xf32> to vector<32x8x1xf32>
    %28 = vector.broadcast %27 : vector<32x8x1xf32> to vector<32x8x128xf32>
    %29 = arith.mulf %0, %28 : vector<32x8x128xf32>
    %cst_14 = arith.constant dense<0.000000e+00> : vector<32x128xf32>
    %30 = vector.multi_reduction <add>, %29, %cst_14 [1] : vector<32x8x128xf32> to vector<32x128xf32>
    %c0_15 = arith.constant 0 : index
    %c0_16 = arith.constant 0 : index
    %31 = vector.load %arg5[%c0_15, %c0_16] : memref<32x128xf32, #tpu.memory_space<vmem>>, vector<32x128xf32>
    tpu.vector_store %arg5[%c0_15, %c0_16], %30 {strides = array<i32>} : memref<32x128xf32, #tpu.memory_space<vmem>>, vector<32x128xf32>,
    return
  }
  func.func @transform_0(%arg0: i32) -> (i32, i32, i32) {
    %c0_i32 = arith.constant 0 : i32
    %c0_i32_0 = arith.constant 0 : i32
    %c0_i32_1 = arith.constant 0 : i32
    return %arg0, %c0_i32, %c0_i32_0 : i32, i32, i32
  }
  func.func @transform_1(%arg0: i32) -> (i32, i32) {
    %c0_i32 = arith.constant 0 : i32
    %c0_i32_0 = arith.constant 0 : i32
    %c0_i32_1 = arith.constant 0 : i32
    return %c0_i32, %c0_i32_0 : i32, i32
  }
  func.func @transform_2(%arg0: i32) -> (i32, i32) {
    %c0_i32 = arith.constant 0 : i32
    %c0_i32_0 = arith.constant 0 : i32
    %c0_i32_1 = arith.constant 0 : i32
    return %c0_i32, %c0_i32_0 : i32, i32
  }
  func.func @transform_3(%arg0: i32) -> (i32, i32) {
    %c0_i32 = arith.constant 0 : i32
    %c0_i32_0 = arith.constant 0 : i32
    %c0_i32_1 = arith.constant 0 : i32
    return %c0_i32, %c0_i32_0 : i32, i32
  }
  func.func @transform_4(%arg0: i32) -> (i32, i32) {
    %c0_i32 = arith.constant 0 : i32
    %c0_i32_0 = arith.constant 0 : i32
    return %arg0, %c0_i32 : i32, i32
  }
  func.func @transform_5(%arg0: i32) -> (i32, i32) {
    %c0_i32 = arith.constant 0 : i32
    %c0_i32_0 = arith.constant 0 : i32
    return %arg0, %c0_i32 : i32, i32
  }
}

</mosaic_0001>

<bundles_post_ra>
// kernel: tpu_custom_call.1
= control target key start
LH: loop header
LB: loop body
LE: loop exit
PB: predicated region body
PF: predicated region fallthrough
CT: control target
= control target key end

     0   :  { %11 = vsyncpa [#allocation3], 0  ;;  %s2754_s0 = inlined_call_operand.hbm [shape: f32[32,8,128], index: 0, kind: input, shape index: {}]   ;;  %s2755_s1 = inlined_call_operand.hbm [shape: f32[128,128], index: 1, kind: input, shape index: {}]   ;;  %s2756_s2 = inlined_call_operand.vmem [shape: f32[1,128], index: 2, kind: input, shape index: {}]   ;;  %s2757_s3 = inlined_call_operand.vmem [shape: f32[1,128], index: 3, kind: input, shape index: {}]   ;;  %s2758_s4 = inlined_call_operand.hbm [shape: f32[32,128], index: 4, kind: output, shape index: {0}]   ;;  %s2759_s5 = inlined_call_operand.vmem [shape: f32[32,8], index: 5, kind: output, shape index: {1}]  }
   0x1   :  { %12 = vsyncpa [#allocation6], 0 }
   0x2   :  { %13 = vsyncpa [#allocation4], 0  ;;  %s2021_s18 = smov [#allocation2]   ;;  %s1949_s22 = scalar_lea.hbm %s2754_s0, 4096 }
   0x3   :  { %s19_s19 = sshll.u32 %s2021_s18, 4  ;;  %p1950_p0 = scmp.ne.s32.totalorder %s2754_s0, %s1949_s22  ;;  %s20_s19 = int_to_ptr.vmem [resolvable:$true] %s19_s19 }
   0x4   :  { %p1953_p1 = scmp.lt.u32.totalorder %s1949_s22, %s2754_s0 }
   0x6   :  { %p1955_p2 = pnand %p1953_p1, %p1950_p0 }
   0x8   :  { %1958 = shalt.err (!%p1955_p2)
}
   0x9   :  { %s1959_s27 = scalar_lea.vmem %s20_s19, 4096  ;;  %p1964_p4 = scmp.lt.s32.totalorder %s20_s19, %s20_s19 }
   0xa   :  { %p1960_p3 = scmp.ne.s32.totalorder %s20_s19, %s1959_s27  ;;  %p1965_p5 = scmp.lt.s32.totalorder %s1959_s27, %s1959_s27 }
   0xc   :  { %p1966_p6 = por %p1965_p5, %p1964_p4 }
   0xe   :  { %p1967_p7 = pnand %p1966_p6, %p1960_p3 }
  0x10   :  { %1970 = shalt.err (!%p1967_p7)
}
  0x11   :  { %s2022_s28 = smov 128   ;;  %s2023_s29 = smov 8  }
  0x12   :  { %25 = dma.hbm_to_vmem [thread:$0]  %s2754_s0, 4096, %s20_s19, [#allocation3], %s2022_s28, %s2022_s28, %s2023_s29  }
  0x13   :  { %s2024_s7 = smov [#allocation5]   ;;  %s1971_s11 = scalar_lea.hbm %s2755_s1, 2048 }
  0x14   :  { %s31_s8 = sshll.u32 %s2024_s7, 4  ;;  %p1972_p8 = scmp.ne.s32.totalorder %s2755_s1, %s1971_s11  ;;  %s32_s8 = int_to_ptr.vmem [resolvable:$true] %s31_s8 }
  0x15   :  { %p1975_p9 = scmp.lt.u32.totalorder %s1971_s11, %s2755_s1 }
  0x17   :  { %p1977_p10 = pnand %p1975_p9, %p1972_p8 }
  0x19   :  { %1980 = shalt.err (!%p1977_p10)
}
  0x1a   :  { %s1981_s16 = scalar_lea.vmem %s32_s8, 2048  ;;  %p1986_p12 = scmp.lt.s32.totalorder %s32_s8, %s32_s8 }
  0x1b   :  { %p1982_p11 = scmp.ne.s32.totalorder %s32_s8, %s1981_s16  ;;  %p1987_p13 = scmp.lt.s32.totalorder %s1981_s16, %s1981_s16 }
  0x1d   :  { %p1988_p0 = por %p1987_p13, %p1986_p12 }
  0x1f   :  { %p1989_p1 = pnand %p1988_p0, %p1982_p11 }
  0x21   :  { %1992 = shalt.err (!%p1989_p1)
}
  0x22   :  { %37 = dma.hbm_to_vmem [thread:$0]  %s2755_s1, 2048, %s32_s8, [#allocation6], %s2022_s28, %s2022_s28, %s2023_s29  }
  0x23   :  { %2015 = dma.done.wait [#allocation3], 4096  }
  0x24   :  { %2016 = vsyncadd [#allocation3], 4294963200 }
  0x25   :  { %2017 = dma.done.wait [#allocation6], 2048  }
  0x26   :  { %2018 = vsyncadd [#allocation6], 4294965248  ;;  %v80_v0 = vld [vmem:[#allocation5] sm:$0xff]  ;;  %v81_v1 = vld [vmem:[#allocation5 + $0x8] sm:$0xff]  ;;  %vm689_vm0 = vcmask 1041409   ;;  %vm691_vm1 = vcmask 1042434  }
  0x27   :  { %v82_v2 = vld [vmem:[#allocation5 + $0x10] sm:$0xff]  ;;  %v1725_v3 = vpack.c.bf16 %v81_v1, %v80_v0  ;;  %v83_v4 = vld [vmem:[#allocation5 + $0x18] sm:$0xff]  ;;  %v84_v6 = vld [vmem:[#allocation5 + $0x20] sm:$0xff]  ;;  %vm693_vm2 = vcmask 1043459   ;;  %vm695_vm3 = vcmask 1044484   ;;  %vm697_vm4 = vcmask 1045509  }
  0x28   :  { %v1729_v5 = vpack.c.bf16 %v83_v4, %v82_v2  ;;  %v85_v7 = vld [vmem:[#allocation5 + $0x28] sm:$0xff]  ;;  %v48_v9 = vld [vmem:[#allocation2] sm:$0xff]  ;;  %v86_v10 = vld [vmem:[#allocation5 + $0x30] sm:$0xff]  ;;  %vm699_vm5 = vcmask 1046534   ;;  %vm701_vm6 = vcmask 1047559   ;;  %vm728_vm7 = vcmask 64512  }
  0x29   :  { %1726 = vmatprep.subr.bf16.mxu0 %v1725_v3  ;;  %1757 = vmatprep.subr.bf16.mxu1 %v1725_v3  ;;  %v1733_v8 = vpack.c.bf16 %v85_v7, %v84_v6  ;;  %v87_v11 = vld [vmem:[#allocation5 + $0x38] sm:$0xff]  ;;  %v64_v12 = vld [vmem:[#allocation2 + $0x80] sm:$0xff]  ;;  %v89_v15 = vld [vmem:[#allocation5 + $0x48] sm:$0xff] }
  0x2a   :  { %1728 = vmatpush3.bf16.msra.mxu0 %v1725_v3  ;;  %1765 = vmatpush3.bf16.msra.mxu1 %v1725_v3  ;;  %v1737_v13 = vpack.c.bf16 %v87_v11, %v86_v10  ;;  %v88_v14 = vld [vmem:[#allocation5 + $0x40] sm:$0xff]  ;;  %v90_v17 = vld [vmem:[#allocation5 + $0x50] sm:$0xff]  ;;  %v91_v18 = vld [vmem:[#allocation5 + $0x58] sm:$0xff] }
  0x2b   :  { %1730 = vmatprep.subr.bf16.mxu0 %v1729_v5  ;;  %1758 = vmatprep.subr.bf16.mxu1 %v1729_v5  ;;  %v1741_v16 = vpack.c.bf16 %v89_v15, %v88_v14  ;;  %v1745_v19 = vpack.c.bf16 %v91_v18, %v90_v17  ;;  %v92_v20 = vld [vmem:[#allocation5 + $0x60] sm:$0xff]  ;;  %v93_v21 = vld [vmem:[#allocation5 + $0x68] sm:$0xff]  ;;  %v94_v23 = vld [vmem:[#allocation5 + $0x70] sm:$0xff] }
  0x2c   :  { %1677 = vmatprep.mubr.f32.mxu0 %v48_v9  ;;  %1701 = vmatprep.mubr.f32.mxu1 %v64_v12  ;;  %v1749_v22 = vpack.c.bf16 %v93_v21, %v92_v20  ;;  %v95_v24 = vld [vmem:[#allocation5 + $0x78] sm:$0xff]  ;;  %v49_v26 = vld [vmem:[#allocation2 + $0x8] sm:$0xff]  ;;  %v50_v28 = vld [vmem:[#allocation2 + $0x10] sm:$0xff] }
  0x2d   :  { %v1753_v25 = vpack.c.bf16 %v95_v24, %v94_v23  ;;  %v65_v27 = vld [vmem:[#allocation2 + $0x88] sm:$0xff]  ;;  %v66_v29 = vld [vmem:[#allocation2 + $0x90] sm:$0xff]  ;;  %v51_v30 = vld [vmem:[#allocation2 + $0x18] sm:$0xff] }
  0x2e   :  { %1732 = vmatpush3.bf16.msra.mxu0 %v1729_v5  ;;  %1766 = vmatpush3.bf16.msra.mxu1 %v1729_v5  ;;  %v67_v31 = vld [vmem:[#allocation2 + $0x98] sm:$0xff]  ;;  %v52_v32 = vld [vmem:[#allocation2 + $0x20] sm:$0xff]  ;;  %v53_v34 = vld [vmem:[#allocation2 + $0x28] sm:$0xff] }
  0x2f   :  { %1734 = vmatprep.subr.bf16.mxu0 %v1733_v8  ;;  %1759 = vmatprep.subr.bf16.mxu1 %v1733_v8  ;;  %v68_v33 = vld [vmem:[#allocation2 + $0xa0] sm:$0xff]  ;;  %v69_v35 = vld [vmem:[#allocation2 + $0xa8] sm:$0xff]  ;;  %v54_v36 = vld [vmem:[#allocation2 + $0x30] sm:$0xff] }
  0x30   :  { %v70_v37 = vld [vmem:[#allocation2 + $0xb0] sm:$0xff]  ;;  %v55_v38 = vld [vmem:[#allocation2 + $0x38] sm:$0xff]  ;;  %v56_v40 = vld [vmem:[#allocation2 + $0x40] sm:$0xff] }
  0x31   :  { %v71_v39 = vld [vmem:[#allocation2 + $0xb8] sm:$0xff]  ;;  %v72_v41 = vld [vmem:[#allocation2 + $0xc0] sm:$0xff]  ;;  %v57_v42 = vld [vmem:[#allocation2 + $0x48] sm:$0xff] }
  0x32   :  { %1736 = vmatpush3.bf16.msra.mxu0 %v1733_v8  ;;  %1767 = vmatpush3.bf16.msra.mxu1 %v1733_v8  ;;  %v73_v43 = vld [vmem:[#allocation2 + $0xc8] sm:$0xff]  ;;  %v58_v44 = vld [vmem:[#allocation2 + $0x50] sm:$0xff]  ;;  %v59_v46 = vld [vmem:[#allocation2 + $0x58] sm:$0xff] }
  0x33   :  { %1738 = vmatprep.subr.bf16.mxu0 %v1737_v13  ;;  %1760 = vmatprep.subr.bf16.mxu1 %v1737_v13  ;;  %v74_v45 = vld [vmem:[#allocation2 + $0xd0] sm:$0xff]  ;;  %v75_v47 = vld [vmem:[#allocation2 + $0xd8] sm:$0xff]  ;;  %v60_v48 = vld [vmem:[#allocation2 + $0x60] sm:$0xff] }
  0x34   :  { %v76_v49 = vld [vmem:[#allocation2 + $0xe0] sm:$0xff]  ;;  %v61_v50 = vld [vmem:[#allocation2 + $0x68] sm:$0xff]  ;;  %v62_v52 = vld [vmem:[#allocation2 + $0x70] sm:$0xff] }
  0x35   :  { %v77_v51 = vld [vmem:[#allocation2 + $0xe8] sm:$0xff]  ;;  %v78_v53 = vld [vmem:[#allocation2 + $0xf0] sm:$0xff]  ;;  %v63_v54 = vld [vmem:[#allocation2 + $0x78] sm:$0xff] }
  0x36   :  { %1740 = vmatpush3.bf16.msra.mxu0 %v1737_v13  ;;  %1768 = vmatpush3.bf16.msra.mxu1 %v1737_v13  ;;  %v79_v55 = vld [vmem:[#allocation2 + $0xf8] sm:$0xff]  ;;  %v2090_v56 = vld [vmem:[%s2756_s2] ss:$0 sm:$0xff] }
  0x37   :  { %1742 = vmatprep.subr.bf16.mxu0 %v1741_v16  ;;  %1761 = vmatprep.subr.bf16.mxu1 %v1741_v16  ;;  %v2105_v11 = vld [vmem:[%s2757_s3] ss:$0 sm:$0xff] }
  0x3a   :  { %1744 = vmatpush3.bf16.msra.mxu0 %v1741_v16  ;;  %1769 = vmatpush3.bf16.msra.mxu1 %v1741_v16 }
  0x3b   :  { %1746 = vmatprep.subr.bf16.mxu0 %v1745_v19  ;;  %1762 = vmatprep.subr.bf16.mxu1 %v1745_v19 }
  0x3e   :  { %1748 = vmatpush3.bf16.msra.mxu0 %v1745_v19  ;;  %1770 = vmatpush3.bf16.msra.mxu1 %v1745_v19 }
  0x3f   :  { %1750 = vmatprep.subr.bf16.mxu0 %v1749_v22  ;;  %1763 = vmatprep.subr.bf16.mxu1 %v1749_v22 }
  0x42   :  { %1752 = vmatpush3.bf16.msra.mxu0 %v1749_v22  ;;  %1771 = vmatpush3.bf16.msra.mxu1 %v1749_v22 }
  0x43   :  { %1754 = vmatprep.subr.bf16.mxu0 %v1753_v25  ;;  %1764 = vmatprep.subr.bf16.mxu1 %v1753_v25 }
  0x46   :  { %1756 = vmatpush3.bf16.msra.mxu0 %v1753_v25  ;;  %1772 = vmatpush3.bf16.msra.mxu1 %v1753_v25 }
  0x49   :  { %1678 = vmatmul.mubr.f32.vlgmr.msra.gmra.mrb[0].mxu0 %v49_v26  ;;  %1702 = vmatmul.mubr.f32.vlgmr.msra.gmra.mrb[0].mxu1 %v65_v27 }
  0x4a   :  { %1680 = vmatprep.mubr.f32.mxu0 %v50_v28  ;;  %1704 = vmatprep.mubr.f32.mxu1 %v66_v29 }
  0x4d   :  { %1681 = vmatmul.mubr.f32.gmra.mrb[2].mxu0 %v51_v30  ;;  %1705 = vmatmul.mubr.f32.gmra.mrb[2].mxu1 %v67_v31 }
  0x4e   :  { %1683 = vmatprep.mubr.f32.mxu0 %v52_v32  ;;  %1707 = vmatprep.mubr.f32.mxu1 %v68_v33 }
  0x51   :  { %1684 = vmatmul.mubr.f32.gmra.mrb[4].mxu0 %v53_v34  ;;  %1708 = vmatmul.mubr.f32.gmra.mrb[4].mxu1 %v69_v35 }
  0x52   :  { %1686 = vmatprep.mubr.f32.mxu0 %v54_v36  ;;  %1710 = vmatprep.mubr.f32.mxu1 %v70_v37 }
  0x55   :  { %1687 = vmatmul.mubr.f32.gmra.mrb[6].mxu0 %v55_v38  ;;  %1711 = vmatmul.mubr.f32.gmra.mrb[6].mxu1 %v71_v39 }
  0x56   :  { %1689 = vmatprep.mubr.f32.mxu0 %v56_v40  ;;  %1713 = vmatprep.mubr.f32.mxu1 %v72_v41 }
  0x59   :  { %1690 = vmatmul.mubr.f32.gmra.mrb[8].mxu0 %v57_v42  ;;  %1714 = vmatmul.mubr.f32.gmra.mrb[8].mxu1 %v73_v43 }
  0x5a   :  { %1692 = vmatprep.mubr.f32.mxu0 %v58_v44  ;;  %1716 = vmatprep.mubr.f32.mxu1 %v74_v45 }
  0x5d   :  { %1693 = vmatmul.mubr.f32.gmra.mrb[10].mxu0 %v59_v46  ;;  %1717 = vmatmul.mubr.f32.gmra.mrb[10].mxu1 %v75_v47 }
  0x5e   :  { %1695 = vmatprep.mubr.f32.mxu0 %v60_v48  ;;  %1719 = vmatprep.mubr.f32.mxu1 %v76_v49 }
  0x61   :  { %1696 = vmatmul.mubr.f32.gmra.mrb[12].mxu0 %v61_v50  ;;  %1720 = vmatmul.mubr.f32.gmra.mrb[12].mxu1 %v77_v51 }
  0x62   :  { %1698 = vmatprep.mubr.f32.mxu0 %v62_v52  ;;  %1722 = vmatprep.mubr.f32.mxu1 %v78_v53 }
  0x65   :  { %1699 = vmatmul.mubr.f32.gmra.mrb[14].mxu0 %v63_v54  ;;  %1723 = vmatmul.mubr.f32.gmra.mrb[14].mxu1 %v79_v55 }
 0x11c   :  { %v1679_v57 = vpop.f32.mrb[0].mxu0  ;;  %v1703_v58 = vpop.f32.mrb[0].mxu1 }
 0x11d   :  { %v175_v59 = vadd.f32 %v1679_v57, %v2090_v56  ;;  %v169_v60 = vpop.f32.mrb[1].mxu0  ;;  %v255_v61 = vadd.f32 %v1703_v58, %v2090_v56  ;;  %v249_v62 = vpop.f32.mrb[1].mxu1 }
 0x11e   :  { %v170_v63 = vadd.f32 %v2090_v56, %v169_v60  ;;  %v250_v0 = vadd.f32 %v2090_v56, %v249_v62 }
 0x11f   :  { %1781 = vtanh.f32 %v175_v59 }
 0x120   :  { %1783 = vtanh.f32 %v170_v63  ;;  %v1682_v1 = vpop.f32.mrb[2].mxu0  ;;  %v1706_v2 = vpop.f32.mrb[2].mxu1 }
 0x121   :  { %1785 = vtanh.f32 %v255_v61  ;;  %v179_v3 = vpop.f32.mrb[3].mxu0  ;;  %v259_v4 = vpop.f32.mrb[3].mxu1  ;;  %v185_v5 = vadd.f32 %v1682_v1, %v2090_v56  ;;  %v265_v10 = vadd.f32 %v1706_v2, %v2090_v56 }
 0x122   :  { %1787 = vtanh.f32 %v250_v0  ;;  %v180_v24 = vadd.f32 %v2090_v56, %v179_v3  ;;  %v260_v35 = vadd.f32 %v2090_v56, %v259_v4 }
 0x123   :  { %1789 = vtanh.f32 %v185_v5 }
 0x124   :  { %v1685_v6 = vpop.f32.mrb[4].mxu0  ;;  %v1709_v7 = vpop.f32.mrb[4].mxu1  ;;  %1791 = vtanh.f32 %v265_v10 }
 0x125   :  { %v2097_v8 = vpop.f32.mrb[5].mxu0  ;;  %v2099_v9 = vpop.f32.mrb[5].mxu1  ;;  %v195_v38 = vadd.f32 %v1685_v6, %v2090_v56  ;;  %v275_v46 = vadd.f32 %v1709_v7, %v2090_v56 }
 0x126   :  { %v190_v0 = vadd.f32 %v2090_v56, %v2097_v8  ;;  %v270_v7 = vadd.f32 %v2090_v56, %v2099_v9 }
 0x128   :  { %v2107_v12 = vpop.f32.mrb[6].mxu0  ;;  %v2109_v13 = vpop.f32.mrb[6].mxu1 }
 0x129   :  { %v1782_v14 = vpop.eup %1781  ;;  %v2111_v15 = vpop.f32.mrb[7].mxu0 }
 0x12a   :  { %v2113_v16 = vpop.f32.mrb[7].mxu1  ;;  %v1784_v17 = vpop.eup %1783  ;;  %v368_v18 = vmul.f32 %v1782_v14, %v2105_v11  ;;  %v200_v8 = vadd.f32 %v2090_v56, %v2111_v15 }
 0x12b   :  { %v1786_v19 = vpop.eup %1785  ;;  %v367_v29 = vmul.f32 %v1784_v17, %v2105_v11  ;;  %v280_v9 = vadd.f32 %v2090_v56, %v2113_v16 }
 0x12c   :  { %401 = vadd.xlane.f32.xlu0 %v368_v18  ;;  %v1691_v20 = vpop.f32.mrb[8].mxu0  ;;  %v1715_v21 = vpop.f32.mrb[8].mxu1  ;;  %v384_v22 = vmul.f32 %v1786_v19, %v2105_v11 }
 0x12d   :  { %v1788_v23 = vpop.eup %1787  ;;  %v215_v25 = vadd.f32 %v1691_v20, %v2090_v56  ;;  %v295_v26 = vadd.f32 %v1715_v21, %v2090_v56  ;;  %v209_v27 = vpop.f32.mrb[9].mxu0 }
 0x12e   :  { %v2120_v28 = vpop.f32.mrb[9].mxu1  ;;  %433 = vadd.xlane.f32.xlu1 %v384_v22  ;;  %v210_v30 = vadd.f32 %v2090_v56, %v209_v27  ;;  %v383_v31 = vmul.f32 %v1788_v23, %v2105_v11  ;;  %v1790_v34 = vpop.eup %1789 }
 0x12f   :  { %1793 = vtanh.f32 %v215_v25  ;;  %v370_v40 = vmul.f32 %v1790_v34, %v2105_v11  ;;  %v1792_v43 = vpop.eup %1791  ;;  %v290_v16 = vadd.f32 %v2090_v56, %v2120_v28 }
 0x130   :  { %1795 = vtanh.f32 %v295_v26  ;;  %399 = vadd.xlane.f32.xlu0 %v367_v29  ;;  %v1694_v32 = vpop.f32.mrb[10].mxu0  ;;  %v1718_v33 = vpop.f32.mrb[10].mxu1  ;;  %v386_v48 = vmul.f32 %v1792_v43, %v2105_v11 }
 0x131   :  { %1797 = vtanh.f32 %v180_v24  ;;  %v219_v36 = vpop.f32.mrb[11].mxu0  ;;  %v299_v37 = vpop.f32.mrb[11].mxu1  ;;  %v225_v39 = vadd.f32 %v1694_v32, %v2090_v56  ;;  %v305_v47 = vadd.f32 %v1718_v33, %v2090_v56 }
 0x132   :  { %1799 = vtanh.f32 %v210_v30  ;;  %v220_v61 = vadd.f32 %v2090_v56, %v219_v36  ;;  %v300_v3 = vadd.f32 %v2090_v56, %v299_v37 }
 0x133   :  { %1801 = vtanh.f32 %v260_v35 }
 0x134   :  { %431 = vadd.xlane.f32.xlu0 %v383_v31  ;;  %v1697_v41 = vpop.f32.mrb[12].mxu0  ;;  %v1721_v42 = vpop.f32.mrb[12].mxu1  ;;  %1803 = vtanh.f32 %v195_v38 }
 0x135   :  { %v2129_v44 = vpop.f32.mrb[13].mxu0  ;;  %v2131_v45 = vpop.f32.mrb[13].mxu1  ;;  %1805 = vtanh.f32 %v225_v39  ;;  %v235_v14 = vadd.f32 %v1697_v41, %v2090_v56  ;;  %v315_v22 = vadd.f32 %v1721_v42, %v2090_v56 }
 0x136   :  { %1807 = vtanh.f32 %v275_v46  ;;  %v230_v32 = vadd.f32 %v2090_v56, %v2129_v44  ;;  %v310_v37 = vadd.f32 %v2090_v56, %v2131_v45 }
 0x137   :  { %1809 = vtanh.f32 %v305_v47  ;;  %v285_v47 = vadd.f32 %v2109_v13, %v2090_v56 }
 0x138   :  { %405 = vadd.xlane.f32.xlu0 %v370_v40  ;;  %v2136_v49 = vpop.f32.mrb[14].mxu0  ;;  %v1724_v50 = vpop.f32.mrb[14].mxu1  ;;  %v205_v40 = vadd.f32 %v2107_v12, %v2090_v56 }
 0x139   :  { %v1794_v51 = vpop.eup %1793  ;;  %v239_v52 = vpop.f32.mrb[15].mxu0  ;;  %v325_v53 = vadd.f32 %v1724_v50, %v2090_v56  ;;  %v245_v42 = vadd.f32 %v2136_v49, %v2090_v56 }
 0x13a   :  { %v319_v54 = vpop.f32.mrb[15].mxu1  ;;  %v1796_v55 = vpop.eup %1795  ;;  %v376_v57 = vmul.f32 %v1794_v51, %v2105_v11  ;;  %v240_v58 = vadd.f32 %v2090_v56, %v239_v52 }
 0x13b   :  { %v320_v59 = vadd.f32 %v2090_v56, %v319_v54  ;;  %v1798_v60 = vpop.eup %1797  ;;  %v392_v62 = vmul.f32 %v1796_v55, %v2105_v11 }
 0x13c   :  { %417 = vadd.xlane.f32.xlu1 %v376_v57  ;;  %437 = vadd.xlane.f32.xlu0 %v386_v48  ;;  %1811 = vtanh.f32 %v240_v58  ;;  %v1800_v63 = vpop.eup %1799  ;;  %v369_v1 = vmul.f32 %v1798_v60, %v2105_v11 }
 0x13d   :  { %1813 = vtanh.f32 %v325_v53  ;;  %v1802_v2 = vpop.eup %1801  ;;  %v375_v5 = vmul.f32 %v1800_v63, %v2105_v11 }
 0x13e   :  { %1815 = vtanh.f32 %v320_v59  ;;  %v1804_v4 = vpop.eup %1803  ;;  %v385_v10 = vmul.f32 %v1802_v2, %v2105_v11 }
 0x13f   :  { %1817 = vtanh.f32 %v220_v61  ;;  %v1806_v6 = vpop.eup %1805  ;;  %v372_v19 = vmul.f32 %v1804_v4, %v2105_v11 }
 0x140   :  { %449 = vadd.xlane.f32.xlu1 %v392_v62  ;;  %403 = vadd.xlane.f32.xlu0 %v369_v1  ;;  %1819 = vtanh.f32 %v190_v0  ;;  %v1808_v17 = vpop.eup %1807  ;;  %v378_v18 = vmul.f32 %v1806_v6, %v2105_v11 }
 0x141   :  { %1821 = vtanh.f32 %v300_v3  ;;  %v1810_v20 = vpop.eup %1809  ;;  %v388_v26 = vmul.f32 %v1808_v17, %v2105_v11 }
 0x142   :  { %1823 = vtanh.f32 %v270_v7  ;;  %v394_v25 = vmul.f32 %v1810_v20, %v2105_v11 }
 0x143   :  { %1825 = vtanh.f32 %v200_v8 }
 0x144   :  { %415 = vadd.xlane.f32.xlu1 %v375_v5  ;;  %435 = vadd.xlane.f32.xlu0 %v385_v10  ;;  %1827 = vtanh.f32 %v235_v14 }
 0x145   :  { %1829 = vtanh.f32 %v280_v9 }
 0x146   :  { %v1812_v21 = vpop.eup %1811  ;;  %1831 = vtanh.f32 %v315_v22 }
 0x147   :  { %v1814_v15 = vpop.eup %1813  ;;  %v2161_v23 = vmul.f32 %v1812_v21, %v2105_v11  ;;  %1833 = vtanh.f32 %v290_v16 }
 0x148   :  { %v1816_v24 = vpop.eup %1815  ;;  %421 = vadd.xlane.f32.xlu1 %v378_v18  ;;  %409 = vadd.xlane.f32.xlu0 %v372_v19  ;;  %v398_v27 = vmul.f32 %v1814_v15, %v2105_v11  ;;  %1835 = vtanh.f32 %v230_v32 }
 0x149   :  { %v1818_v29 = vpop.eup %1817  ;;  %v397_v30 = vmul.f32 %v1816_v24, %v2105_v11  ;;  %1837 = vtanh.f32 %v310_v37 }
 0x14a   :  { %v1820_v31 = vpop.eup %1819  ;;  %v377_v33 = vmul.f32 %v1818_v29, %v2105_v11  ;;  %1839 = vtanh.f32 %v205_v40 }
 0x14b   :  { %v1822_v34 = vpop.eup %1821  ;;  %v371_v35 = vmul.f32 %v1820_v31, %v2105_v11  ;;  %1841 = vtanh.f32 %v245_v42 }
 0x14c   :  { %453 = vadd.xlane.f32.xlu1 %v394_v25  ;;  %441 = vadd.xlane.f32.xlu0 %v388_v26  ;;  %v1824_v36 = vpop.eup %1823  ;;  %v393_v28 = vmul.f32 %v1822_v34, %v2105_v11  ;;  %1843 = vtanh.f32 %v285_v47 }
 0x14d   :  { %v1826_v38 = vpop.eup %1825  ;;  %v387_v41 = vmul.f32 %v1824_v36, %v2105_v11 }
 0x14e   :  { %v1828_v39 = vpop.eup %1827  ;;  %v373_v45 = vmul.f32 %v1826_v38, %v2105_v11 }
 0x14f   :  { %v1830_v43 = vpop.eup %1829  ;;  %v380_v44 = vmul.f32 %v1828_v39, %v2105_v11 }
 0x150   :  { %419 = vadd.xlane.f32.xlu1 %v377_v33  ;;  %407 = vadd.xlane.f32.xlu0 %v371_v35  ;;  %v1832_v46 = vpop.eup %1831  ;;  %v389_v49 = vmul.f32 %v1830_v43, %v2105_v11 }
 0x151   :  { %v1834_v12 = vpop.eup %1833  ;;  %v396_v48 = vmul.f32 %v1832_v46, %v2105_v11 }
 0x152   :  { %v1836_v50 = vpop.eup %1835  ;;  %v391_v52 = vmul.f32 %v1834_v12, %v2105_v11 }
 0x153   :  { %v379_v51 = vmul.f32 %v1836_v50, %v2105_v11  ;;  %v1838_v53 = vpop.eup %1837 }
 0x154   :  { %451 = vadd.xlane.f32.xlu1 %v393_v28  ;;  %439 = vadd.xlane.f32.xlu0 %v387_v41  ;;  %v1840_v54 = vpop.eup %1839  ;;  %v395_v56 = vmul.f32 %v1838_v53, %v2105_v11  ;;  %v559_v28 = vlaneseq }
 0x155   :  { %v1842_v13 = vpop.eup %1841  ;;  %v374_v55 = vmul.f32 %v1840_v54, %v2105_v11 }
 0x156   :  { %v1844_v57 = vpop.eup %1843  ;;  %v382_v58 = vmul.f32 %v1842_v13, %v2105_v11 }
 0x157   :  { %v390_v59 = vmul.f32 %v1844_v57, %v2105_v11 }
 0x158   :  { %425 = vadd.xlane.f32.xlu1 %v380_v44  ;;  %411 = vadd.xlane.f32.xlu0 %v373_v45 }
 0x15c   :  { %457 = vadd.xlane.f32.xlu1 %v396_v48  ;;  %443 = vadd.xlane.f32.xlu0 %v389_v49  ;;  %v560_v48 = vand.u32 127, %v559_v28  ;;  %v2210_v49 = vshrl.u32 %v559_v28, 7 }
 0x160   :  { %423 = vadd.xlane.f32.xlu1 %v379_v51  ;;  %447 = vadd.xlane.f32.xlu0 %v391_v52 }
 0x164   :  { %455 = vadd.xlane.f32.xlu1 %v395_v56  ;;  %413 = vadd.xlane.f32.xlu0 %v374_v55 }
 0x168   :  { %429 = vadd.xlane.f32.xlu1 %v382_v58  ;;  %445 = vadd.xlane.f32.xlu0 %v390_v59  ;;  %v2221_v58 = vsub.s32 %v560_v48, %v2210_v49 }
 0x16c   :  { %427 = vadd.xlane.f32.xlu1 %v2161_v23 }
 0x170   :  { %459 = vadd.xlane.f32.xlu1 %v397_v30 }
 0x174   :  { %461 = vadd.xlane.f32.xlu1 %v398_v27 }
 0x1b9   :  { %v402_v60 = vpop.xlane.xlu0 %401 }
 0x1ba   :  { %v465_v14 = vmul.f32 1.442695, %v402_v60 }
 0x1bb   :  { %v434_v63 = vpop.xlane.xlu1 %433 }
 0x1bc   :  { %v497_v17 = vmul.f32 1.442695, %v434_v63  ;;  %1845 = vpow2.f32 %v465_v14 }
 0x1bd   :  { %v400_v61 = vpop.xlane.xlu0 %399 }
 0x1be   :  { %v463_v18 = vmul.f32 1.442695, %v400_v61  ;;  %1847 = vpow2.f32 %v497_v17 }
 0x1c0   :  { %1849 = vpow2.f32 %v463_v18 }
 0x1c1   :  { %v432_v62 = vpop.xlane.xlu0 %431 }
 0x1c2   :  { %v495_v21 = vmul.f32 1.442695, %v432_v62 }
 0x1c4   :  { %1851 = vpow2.f32 %v495_v21 }
 0x1c5   :  { %v406_v0 = vpop.xlane.xlu0 %405 }
 0x1c6   :  { %v469_v9 = vmul.f32 1.442695, %v406_v0  ;;  %v2196_v34 = vpop.eup %1845 }
 0x1c8   :  { %1853 = vpow2.f32 %v469_v9  ;;  %v2200_v38 = vpop.eup %1847 }
 0x1c9   :  { %v418_v1 = vpop.xlane.xlu1 %417  ;;  %v438_v2 = vpop.xlane.xlu0 %437 }
 0x1ca   :  { %v481_v15 = vmul.f32 1.442695, %v418_v1  ;;  %v501_v22 = vmul.f32 1.442695, %v438_v2  ;;  %v2202_v40 = vpop.eup %1849 }
 0x1cb   :  { %v564_v0 = vrot.slane %v2202_v40, %v2221_v58 }
 0x1cc   :  { %1855 = vpow2.f32 %v481_v15 }
 0x1cd   :  { %v450_v3 = vpop.xlane.xlu1 %449  ;;  %v404_v4 = vpop.xlane.xlu0 %403  ;;  %1857 = vpow2.f32 %v501_v22 }
 0x1ce   :  { %v513_v25 = vmul.f32 1.442695, %v450_v3  ;;  %v467_v26 = vmul.f32 1.442695, %v404_v4  ;;  %v2204_v42 = vpop.eup %1851 }
 0x1cf   :  { %v628_v14 = vrot.slane %v2204_v42, %v2221_v58 }
 0x1d0   :  { %1859 = vpow2.f32 %v513_v25 }
 0x1d1   :  { %v416_v5 = vpop.xlane.xlu1 %415  ;;  %v436_v6 = vpop.xlane.xlu0 %435  ;;  %1861 = vpow2.f32 %v467_v26 }
 0x1d2   :  { %v479_v27 = vmul.f32 1.442695, %v416_v5  ;;  %v499_v29 = vmul.f32 1.442695, %v436_v6  ;;  %v2206_v44 = vpop.eup %1853  ;;  %v568_v6 = vrot.slane %v2196_v34, %v2221_v58 }
 0x1d3   :  { %v576_v26 = vrot.slane %v2206_v44, %v2221_v58 }
 0x1d4   :  { %1863 = vpow2.f32 %v479_v27  ;;  %v690_v21 = vsel %vm689_vm0, %v568_v6, %v564_v0 }
 0x1d5   :  { %v422_v7 = vpop.xlane.xlu1 %421  ;;  %v410_v8 = vpop.xlane.xlu0 %409  ;;  %1865 = vpow2.f32 %v499_v29 }
 0x1d6   :  { %v485_v31 = vmul.f32 1.442695, %v422_v7  ;;  %v473_v32 = vmul.f32 1.442695, %v410_v8  ;;  %v2208_v12 = vpop.eup %1855 }
 0x1d7   :  { %v2212_v51 = vpop.eup %1857 }
 0x1d8   :  { %1867 = vpow2.f32 %v485_v31 }
 0x1d9   :  { %v2194_v11 = vpop.xlane.xlu1 %453  ;;  %v442_v10 = vpop.xlane.xlu0 %441  ;;  %1869 = vpow2.f32 %v473_v32 }
 0x1da   :  { %v505_v35 = vmul.f32 1.442695, %v442_v10  ;;  %v2214_v53 = vpop.eup %1859  ;;  %v517_v59 = vmul.f32 1.442695, %v2194_v11  ;;  %v632_v10 = vrot.slane %v2200_v38, %v2221_v58 }
 0x1db   :  { %v2216_v56 = vpop.eup %1861 }
 0x1dc   :  { %v572_v2 = vrot.slane %v2216_v56, %v2221_v58  ;;  %v710_v31 = vsel %vm689_vm0, %v632_v10, %v628_v14 }
 0x1dd   :  { %v420_v19 = vpop.xlane.xlu1 %419  ;;  %v408_v20 = vpop.xlane.xlu0 %407 }
 0x1de   :  { %v471_v33 = vmul.f32 1.442695, %v408_v20  ;;  %v483_v39 = vmul.f32 1.442695, %v420_v19  ;;  %v2218_v57 = vpop.eup %1863  ;;  %v600_v19 = vrot.slane %v2208_v12, %v2221_v58 }
 0x1df   :  { %v2224_v61 = vpop.eup %1865  ;;  %v596_v15 = vrot.slane %v2218_v57, %v2221_v58 }
 0x1e0   :  { %1871 = vpow2.f32 %v471_v33  ;;  %v636_v20 = vrot.slane %v2224_v61, %v2221_v58 }
 0x1e1   :  { %v452_v23 = vpop.xlane.xlu1 %451  ;;  %v440_v24 = vpop.xlane.xlu0 %439  ;;  %1873 = vpow2.f32 %v505_v35 }
 0x1e2   :  { %v503_v41 = vmul.f32 1.442695, %v440_v24  ;;  %v515_v45 = vmul.f32 1.442695, %v452_v23  ;;  %1875 = vpow2.f32 %v483_v39  ;;  %v2226_v63 = vpop.eup %1867  ;;  %v692_v24 = vsel %vm691_vm1, %v572_v2, %v690_v21 }
 0x1e3   :  { %v2230_v1 = vpop.eup %1869  ;;  %v694_v35 = vsel %vm693_vm2, %v576_v26, %v692_v24 }
 0x1e4   :  { %1877 = vpow2.f32 %v503_v41  ;;  %v584_v48 = vrot.slane %v2230_v1, %v2221_v58 }
 0x1e5   :  { %v426_v30 = vpop.xlane.xlu1 %425  ;;  %v412_v16 = vpop.xlane.xlu0 %411 }
 0x1e6   :  { %v475_v43 = vmul.f32 1.442695, %v412_v16  ;;  %v489_v62 = vmul.f32 1.442695, %v426_v30  ;;  %v640_v16 = vrot.slane %v2212_v51, %v2221_v58 }
 0x1e8   :  { %1879 = vpow2.f32 %v475_v43 }
 0x1e9   :  { %v2198_v36 = vpop.xlane.xlu1 %457  ;;  %v444_v37 = vpop.xlane.xlu0 %443  ;;  %1881 = vpow2.f32 %v515_v45  ;;  %v703_v45 = vsel %vm689_vm0, %v600_v19, %v596_v15 }
 0x1ea   :  { %v507_v52 = vmul.f32 1.442695, %v444_v37  ;;  %v2234_v5 = vpop.eup %1871  ;;  %v521_v27 = vmul.f32 1.442695, %v2198_v36  ;;  %v711_v36 = vsel %vm691_vm1, %v636_v20, %v710_v31 }
 0x1eb   :  { %v2238_v11 = vpop.eup %1873  ;;  %v580_v22 = vrot.slane %v2234_v5, %v2221_v58 }
 0x1ec   :  { %v2244_v18 = vpop.eup %1875  ;;  %v648_v20 = vrot.slane %v2238_v11, %v2221_v58 }
 0x1ed   :  { %v424_v46 = vpop.xlane.xlu1 %423  ;;  %v448_v47 = vpop.xlane.xlu0 %447  ;;  %v604_v33 = vrot.slane %v2244_v18, %v2221_v58  ;;  %v696_v43 = vsel %vm695_vm3, %v580_v22, %v694_v35 }
 0x1ee   :  { %v511_v50 = vmul.f32 1.442695, %v448_v47  ;;  %v487_v54 = vmul.f32 1.442695, %v424_v46  ;;  %v2251_v9 = vpop.eup %1877 }
 0x1ef   :  { %v644_v28 = vrot.slane %v2251_v9, %v2221_v58  ;;  %v704_v0 = vsel %vm691_vm1, %v604_v33, %v703_v45 }
 0x1f0   :  { %1883 = vpow2.f32 %v511_v50 }
 0x1f1   :  { %v456_v13 = vpop.xlane.xlu1 %455  ;;  %v414_v55 = vpop.xlane.xlu0 %413  ;;  %1885 = vpow2.f32 %v507_v52  ;;  %v664_v52 = vrot.slane %v2214_v53, %v2221_v58 }
 0x1f2   :  { %v477_v60 = vmul.f32 1.442695, %v414_v55  ;;  %1887 = vpow2.f32 %v487_v54  ;;  %v519_v17 = vmul.f32 1.442695, %v456_v13  ;;  %v2258_v25 = vpop.eup %1879  ;;  %v608_v54 = vrot.slane %v2226_v63, %v2221_v58 }
 0x1f3   :  { %v2263_v30 = vpop.eup %1881  ;;  %v588_v41 = vrot.slane %v2258_v25, %v2221_v58  ;;  %v712_v55 = vsel %vm693_vm2, %v640_v16, %v711_v36 }
 0x1f4   :  { %1889 = vpow2.f32 %v477_v60  ;;  %v668_v14 = vrot.slane %v2263_v30, %v2221_v58  ;;  %v705_v22 = vsel %vm693_vm2, %v608_v54, %v704_v0 }
 0x1f5   :  { %v430_v3 = vpop.xlane.xlu1 %429  ;;  %v446_v4 = vpop.xlane.xlu0 %445  ;;  %1891 = vpow2.f32 %v517_v59 }
 0x1f6   :  { %v493_v7 = vmul.f32 1.442695, %v430_v3  ;;  %v509_v8 = vmul.f32 1.442695, %v446_v4  ;;  %1893 = vpow2.f32 %v489_v62  ;;  %v698_v62 = vsel %vm697_vm4, %v584_v48, %v696_v43 }
 0x1f7   :  { %v700_v6 = vsel %vm699_vm5, %v588_v41, %v698_v62 }
 0x1f8   :  { %1895 = vpow2.f32 %v493_v7 }
 0x1f9   :  { %1897 = vpow2.f32 %v509_v8  ;;  %v428_v23 = vpop.xlane.xlu1 %427  ;;  %v713_v8 = vsel %vm695_vm3, %v644_v28, %v712_v55 }
 0x1fa   :  { %v491_v29 = vmul.f32 1.442695, %v428_v23  ;;  %1899 = vpow2.f32 %v519_v17  ;;  %v2268_v32 = vpop.eup %1883  ;;  %v714_v26 = vsel %vm697_vm4, %v648_v20, %v713_v8 }
 0x1fb   :  { %v2274_v37 = vpop.eup %1885  ;;  %v660_v13 = vrot.slane %v2268_v32, %v2221_v58 }
 0x1fc   :  { %1901 = vpow2.f32 %v491_v29  ;;  %v2282_v46 = vpop.eup %1887  ;;  %v652_v7 = vrot.slane %v2274_v37, %v2221_v58 }
 0x1fd   :  { %v460_v39 = vpop.xlane.xlu1 %459  ;;  %1903 = vpow2.f32 %v521_v27  ;;  %v612_v3 = vrot.slane %v2282_v46, %v2221_v58  ;;  %v717_v23 = vsel %vm689_vm0, %v664_v52, %v660_v13 }
 0x1fe   :  { %v523_v47 = vmul.f32 1.442695, %v460_v39  ;;  %v2286_v50 = vpop.eup %1889  ;;  %v715_v31 = vsel %vm699_vm5, %v652_v7, %v714_v26  ;;  %v718_v39 = vsel %vm691_vm1, %v668_v14, %v717_v23 }
 0x1ff   :  { %v2295_v59 = vpop.eup %1891  ;;  %v592_v60 = vrot.slane %v2286_v50, %v2221_v58  ;;  %v706_v33 = vsel %vm695_vm3, %v612_v3, %v705_v22 }
 0x200   :  { %1905 = vpow2.f32 %v523_v47  ;;  %v2301_v2 = vpop.eup %1893  ;;  %v672_v16 = vrot.slane %v2295_v59, %v2221_v58 }
 0x201   :  { %v462_v4 = vpop.xlane.xlu1 %461  ;;  %v702_v19 = vsel %vm701_vm6, %v592_v60, %v700_v6  ;;  %v616_v27 = vrot.slane %v2301_v2, %v2221_v58 }
 0x202   :  { %v2309_v10 = vpop.eup %1895  ;;  %v525_v17 = vmul.f32 1.442695, %v462_v4  ;;  %v729_v15 = vsel %vm728_vm7, %v702_v19, 0.0  ;;  %v719_v54 = vsel %vm693_vm2, %v672_v16, %v718_v39  ;;  %v2025_v19 = vmov 0  }
 0x203   :  { %v2316_v21 = vpop.eup %1897  ;;  %730 = vadd.xlane.f32.xlu0 %v729_v15  ;;  %v624_v28 = vrot.slane %v2309_v10, %v2221_v58  ;;  %v707_v48 = vsel %vm697_vm4, %v616_v27, %v706_v33  ;;  %1780 = vset.pattern.permute.xlu1 %v2025_v19  ;;  %v2369_v39 = vsub.s32 0, %v2210_v49 }
 0x204   :  { %1907 = vpow2.f32 %v525_v17  ;;  %v656_v24 = vrot.slane %v2316_v21, %v2221_v58  ;;  %v2326_v29 = vpop.eup %1899  ;;  %1779 = vset.pattern.permute.xlu0 %v2025_v19 }
 0x205   :  { %v676_v47 = vrot.slane %v2326_v29, %v2221_v58 }
 0x206   :  { %v2332_v35 = vpop.eup %1901  ;;  %v716_v36 = vsel %vm701_vm6, %v656_v24, %v715_v31 }
 0x207   :  { %v735_v41 = vsel %vm728_vm7, %v716_v36, 0.0  ;;  %v620_v43 = vrot.slane %v2332_v35, %v2221_v58  ;;  %v2341_v45 = vpop.eup %1903  ;;  %v720_v3 = vsel %vm695_vm3, %v676_v47, %v719_v54 }
 0x208   :  { %736 = vadd.xlane.f32.xlu0 %v735_v41  ;;  %v680_v62 = vrot.slane %v2341_v45, %v2221_v58 }
 0x209   :  { %v708_v52 = vsel %vm699_vm5, %v620_v43, %v707_v48  ;;  %v2372_v48 = vsub.s32 2, %v2210_v49 }
 0x20a   :  { %v2348_v13 = vpop.eup %1905  ;;  %v709_v55 = vsel %vm701_vm6, %v624_v28, %v708_v52  ;;  %v721_v7 = vsel %vm697_vm4, %v680_v62, %v720_v3  ;;  %v2366_v28 = vsub.s32 1, %v2210_v49 }
 0x20b   :  { %v732_v60 = vsel %vm728_vm7, %v709_v55, 0.0  ;;  %v684_v0 = vrot.slane %v2348_v13, %v2221_v58 }
 0x20c   :  { %733 = vadd.xlane.f32.xlu1 %v732_v60  ;;  %v2377_v60 = vsub.s32 3, %v2210_v49 }
 0x20d   :  { %v722_v8 = vsel %vm699_vm5, %v684_v0, %v721_v7 }
 0x20e   :  { %v2357_v4 = vpop.eup %1907 }
 0x20f   :  { %v688_v6 = vrot.slane %v2357_v4, %v2221_v58 }
 0x211   :  { %v723_v14 = vsel %vm701_vm6, %v688_v6, %v722_v8 }
 0x212   :  { %v738_v17 = vsel %vm728_vm7, %v723_v14, 0.0 }
 0x213   :  { %739 = vadd.xlane.f32.xlu1 %v738_v17  ;;  %v2388_v17 = vsub.s32 4, %v2210_v49 }
 0x290   :  { %v731_v20 = vpop.xlane.xlu0 %730 }
 0x291   :  { %v741_v15 = vadd.f32 1e-07, %v731_v20 }
 0x293   :  { %1909 = vrcp.f32 %v741_v15 }
 0x295   :  { %v737_v22 = vpop.xlane.xlu0 %736 }
 0x296   :  { %v743_v23 = vadd.f32 1e-07, %v737_v22 }
 0x298   :  { %1911 = vrcp.f32 %v743_v23 }
 0x299   :  { %v734_v24 = vpop.xlane.xlu1 %733 }
 0x29a   :  { %v742_v26 = vadd.f32 1e-07, %v734_v24  ;;  %v787_v24 = vsub.s32 5, %v2210_v49 }
 0x29c   :  { %1913 = vrcp.f32 %v742_v26 }
 0x29d   :  { %v1910_v27 = vpop.eup %1909 }
 0x29e   :  { %v749_v16 = vmul.f32 %v1910_v27, %v741_v15 }
 0x2a0   :  { %v740_v31 = vpop.xlane.xlu1 %739  ;;  %v753_v33 = vsub.f32 2.0, %v749_v16 }
 0x2a1   :  { %v744_v36 = vadd.f32 1e-07, %v740_v31 }
 0x2a2   :  { %v1912_v41 = vpop.eup %1911  ;;  %v757_v43 = vmul.f32 %v1910_v27, %v753_v33 }
 0x2a3   :  { %v751_v47 = vmul.f32 %v1912_v41, %v743_v23  ;;  %1915 = vrcp.f32 %v744_v36 }
 0x2a4   :  { %v772_v54 = vrot.slane %v757_v43, %v2366_v28  ;;  %v768_v55 = vrot.slane %v757_v43, %v2369_v39  ;;  %v776_v6 = vrot.slane %v757_v43, %v2372_v48  ;;  %v780_v14 = vrot.slane %v757_v43, %v2377_v60 }
 0x2a5   :  { %v755_v52 = vsub.f32 2.0, %v751_v47  ;;  %v784_v23 = vrot.slane %v757_v43, %v2388_v17  ;;  %v788_v33 = vrot.slane %v757_v43, %v787_v24 }
 0x2a6   :  { %v926_v0 = vmul.f32 %v2196_v34, %v772_v54  ;;  %v925_v3 = vmul.f32 %v2202_v40, %v768_v55  ;;  %v1914_v7 = vpop.eup %1913  ;;  %v927_v20 = vmul.f32 %v2216_v56, %v776_v6  ;;  %v928_v22 = vmul.f32 %v2206_v44, %v780_v14 }
 0x2a7   :  { %v2379_v62 = vmul.f32 %v1912_v41, %v755_v52  ;;  %v750_v19 = vmul.f32 %v1914_v7, %v742_v26  ;;  %v929_v31 = vmul.f32 %v2234_v5, %v784_v23  ;;  %v2411_v52 = vsub.s32 7, %v2210_v49 }
 0x2a8   :  { %993 = vperm.xlu1 %1780, %v926_v0   ;;  %990 = vperm.xlu0 %1779, %v925_v3   ;;  %v930_v5 = vmul.f32 %v2230_v1, %v788_v33 }
 0x2a9   :  { %v832_v8 = vrot.slane %v2379_v62, %v2369_v39  ;;  %v840_v40 = vrot.slane %v2379_v62, %v2372_v48  ;;  %v754_v27 = vsub.f32 2.0, %v750_v19  ;;  %v848_v56 = vrot.slane %v2379_v62, %v2388_v17 }
 0x2aa   :  { %v796_v6 = vrot.slane %v757_v43, %v2411_v52  ;;  %v852_v19 = vrot.slane %v2379_v62, %v787_v24 }
 0x2ab   :  { %v941_v34 = vmul.f32 %v2204_v42, %v832_v8  ;;  %v943_v26 = vmul.f32 %v2224_v61, %v840_v40  ;;  %v2401_v42 = vsub.s32 6, %v2210_v49  ;;  %v2404_v44 = vmul.f32 %v1914_v7, %v754_v27 }
 0x2ac   :  { %996 = vperm.xlu1 %1780, %v927_v20   ;;  %v945_v47 = vmul.f32 %v2251_v9, %v848_v56  ;;  %v932_v1 = vmul.f32 %v2286_v50, %v796_v6  ;;  %v836_v7 = vrot.slane %v2379_v62, %v2366_v28  ;;  %v1921_v6 = vld [vmem:[#allocation2 + $0x18] sm:$0xff] }
 0x2ad   :  { %v1916_v15 = vpop.eup %1915  ;;  %1038 = vperm.xlu0 %1779, %v941_v34   ;;  %v792_v61 = vrot.slane %v757_v43, %v2401_v42  ;;  %v804_v0 = vrot.slane %v2404_v44, %v2366_v28  ;;  %v812_v8 = vrot.slane %v2404_v44, %v2377_v60  ;;  %v844_v43 = vrot.slane %v2379_v62, %v2377_v60 }
 0x2ae   :  { %v752_v16 = vmul.f32 %v1916_v15, %v744_v36  ;;  %v856_v36 = vrot.slane %v2379_v62, %v2401_v42  ;;  %v820_v20 = vrot.slane %v2404_v44, %v787_v24  ;;  %v800_v34 = vrot.slane %v2404_v44, %v2369_v39 }
 0x2af   :  { %v931_v9 = vmul.f32 %v2258_v25, %v792_v61  ;;  %v934_v3 = vmul.f32 %v2208_v12, %v804_v0  ;;  %v942_v12 = vmul.f32 %v2200_v38, %v836_v7  ;;  %v936_v25 = vmul.f32 %v2226_v63, %v812_v8 }
 0x2b0   :  { %999 = vperm.xlu1 %1780, %v928_v22   ;;  %v756_v41 = vsub.f32 2.0, %v752_v16  ;;  %v947_v55 = vmul.f32 %v2274_v37, %v856_v36  ;;  %v946_v38 = vmul.f32 %v2238_v11, %v852_v19  ;;  %v938_v63 = vmul.f32 %v2301_v2, %v820_v20 }
 0x2b1   :  { %1044 = vperm.xlu0 %1779, %v943_v26   ;;  %v808_v40 = vrot.slane %v2404_v44, %v2372_v48  ;;  %v1917_v26 = vld [vmem:[#allocation2 + $0x8] sm:$0xff] }
 0x2b2   :  { %v2413_v54 = vmul.f32 %v1916_v15, %v756_v41  ;;  %v828_v15 = vrot.slane %v2404_v44, %v2411_v52 }
 0x2b3   :  { %v935_v11 = vmul.f32 %v2244_v18, %v808_v40 }
 0x2b4   :  { %1002 = vperm.xlu1 %1780, %v929_v31   ;;  %v864_v49 = vrot.slane %v2413_v54, %v2369_v39  ;;  %v876_v50 = vrot.slane %v2413_v54, %v2377_v60  ;;  %v884_v60 = vrot.slane %v2413_v54, %v787_v24  ;;  %v940_v2 = vmul.f32 %v2309_v10, %v828_v15  ;;  %v1918_v31 = vld [vmem:[#allocation2] sm:$0xff] }
 0x2b5   :  { %1050 = vperm.xlu0 %1779, %v945_v47   ;;  %v868_v39 = vrot.slane %v2413_v54, %v2366_v28  ;;  %v872_v23 = vrot.slane %v2413_v54, %v2372_v48  ;;  %v816_v10 = vrot.slane %v2404_v44, %v2388_v17  ;;  %v880_v24 = vrot.slane %v2413_v54, %v2388_v17  ;;  %v1919_v47 = vld [vmem:[#allocation2 + $0x10] sm:$0xff] }
 0x2b6   :  { %v949_v37 = vmul.f32 %v2268_v32, %v864_v49  ;;  %v944_v32 = vmul.f32 %v2212_v51, %v844_v43  ;;  %v952_v14 = vmul.f32 %v2295_v59, %v876_v50  ;;  %v933_v51 = vmul.f32 %v2218_v57, %v800_v34  ;;  %v1923_v34 = vld [vmem:[#allocation2 + $0x20] sm:$0xff] }
 0x2b7   :  { %v954_v59 = vmul.f32 %v2341_v45, %v884_v60  ;;  %v892_v57 = vrot.slane %v2413_v54, %v2411_v52  ;;  %v950_v45 = vmul.f32 %v2214_v53, %v868_v39  ;;  %v951_v18 = vmul.f32 %v2263_v30, %v872_v23 }
 0x2b8   :  { %1005 = vperm.xlu1 %1780, %v930_v5   ;;  %v937_v28 = vmul.f32 %v2282_v46, %v816_v10  ;;  %v953_v53 = vmul.f32 %v2326_v29, %v880_v24  ;;  %v888_v30 = vrot.slane %v2413_v54, %v2401_v42  ;;  %v860_v46 = vrot.slane %v2379_v62, %v2411_v52  ;;  %v1920_v62 = vld [vmem:[#allocation2 + $0x80] sm:$0xff] }
 0x2b9   :  { %1056 = vperm.xlu0 %1779, %v947_v55   ;;  %v956_v22 = vmul.f32 %v2357_v4, %v892_v57  ;;  %v824_v4 = vrot.slane %v2404_v44, %v2401_v42 }
 0x2ba   :  { %v955_v27 = vmul.f32 %v2348_v13, %v888_v30  ;;  %v948_v17 = vmul.f32 %v2316_v21, %v860_v46 }
 0x2bb   :  { %v939_v48 = vmul.f32 %v2332_v35, %v824_v4 }
 0x2bc   :  { %1008 = vperm.xlu1 %1780, %v931_v9  }
 0x2bd   :  { %1017 = vperm.xlu0 %1779, %v934_v3  }
 0x2c0   :  { %1011 = vperm.xlu1 %1780, %v932_v1   ;;  %v1922_v1 = vld [vmem:[#allocation2 + $0x90] sm:$0xff] }
 0x2c1   :  { %1062 = vperm.xlu0 %1779, %v949_v37  }
 0x2c4   :  { %1041 = vperm.xlu1 %1780, %v942_v12  }
 0x2c5   :  { %1023 = vperm.xlu0 %1779, %v936_v25  }
 0x2c8   :  { %1047 = vperm.xlu1 %1780, %v944_v32  }
 0x2c9   :  { %1071 = vperm.xlu0 %1779, %v952_v14  }
 0x2cc   :  { %1053 = vperm.xlu1 %1780, %v946_v38  }
 0x2cd   :  { %1029 = vperm.xlu0 %1779, %v938_v63  }
 0x2d0   :  { %1014 = vperm.xlu1 %1780, %v933_v51  }
 0x2d1   :  { %1077 = vperm.xlu0 %1779, %v954_v59  }
 0x2d4   :  { %1020 = vperm.xlu1 %1780, %v935_v11  }
 0x2d5   :  { %1035 = vperm.xlu0 %1779, %v940_v2  }
 0x2d8   :  { %1065 = vperm.xlu1 %1780, %v950_v45  }
 0x2d9   :  { %1083 = vperm.xlu0 %1779, %v956_v22  }
 0x2dc   :  { %1068 = vperm.xlu1 %1780, %v951_v18   ;;  %v1924_v18 = vld [vmem:[#allocation2 + $0xa0] sm:$0xff] }
 0x2e0   :  { %1026 = vperm.xlu1 %1780, %v937_v28   ;;  %v1925_v28 = vld [vmem:[#allocation2 + $0x28] sm:$0xff] }
 0x2e4   :  { %1074 = vperm.xlu1 %1780, %v953_v53  }
 0x2e8   :  { %1032 = vperm.xlu1 %1780, %v939_v48  }
 0x2ec   :  { %1080 = vperm.xlu1 %1780, %v955_v27  }
 0x2f0   :  { %1059 = vperm.xlu1 %1780, %v948_v17  }
 0x327   :  { %v994_v29 = vpop.permute.xlu1 %993  ;;  %v991_v16 = vpop.permute.xlu0 %990 }
 0x328   :  { %v1282_v56 = vmul.f32 %v1917_v26, %v994_v29  ;;  %v1281_v33 = vmul.f32 %v1918_v31, %v991_v16  ;;  %v1092_v7 = vrot.slane %v994_v29, %v2221_v58  ;;  %v1088_v8 = vrot.slane %v991_v16, %v2221_v58 }
 0x32a   :  { %v1319_v35 = vrot.slane %v1282_v56, 4  ;;  %v1313_v44 = vrot.slane %v1281_v33, 4  ;;  %v1213_v51 = vsel %vm689_vm0, %v1092_v7, %v1088_v8 }
 0x32b   :  { %v997_v41 = vpop.permute.xlu1 %996 }
 0x32c   :  { %v2477_v42 = vpop.permute.xlu0 %1038  ;;  %v1283_v13 = vmul.f32 %v1919_v47, %v997_v41  ;;  %v1320_v36 = vadd.f32 %v1319_v35, %v1282_v56  ;;  %v1314_v61 = vadd.f32 %v1313_v44, %v1281_v33  ;;  %v1096_v19 = vrot.slane %v997_v41, %v2221_v58 }
 0x32d   :  { %v1297_v52 = vmul.f32 %v1920_v62, %v2477_v42  ;;  %v1152_v59 = vrot.slane %v2477_v42, %v2221_v58 }
 0x32e   :  { %v1325_v21 = vrot.slane %v1283_v13, 4  ;;  %v1321_v9 = vrot.slane %v1320_v36, 2  ;;  %v1315_v3 = vrot.slane %v1314_v61, 2  ;;  %v1214_v22 = vsel %vm691_vm1, %v1096_v19, %v1213_v51 }
 0x32f   :  { %v1409_v54 = vrot.slane %v1297_v52, 4  ;;  %v1000_v5 = vpop.permute.xlu1 %999 }
 0x330   :  { %v2480_v55 = vpop.permute.xlu0 %1044  ;;  %v1326_v0 = vadd.f32 %v1325_v21, %v1283_v13  ;;  %v1284_v49 = vmul.f32 %v1921_v6, %v1000_v5  ;;  %v1322_v20 = vadd.f32 %v1321_v9, %v1320_v36  ;;  %v1316_v38 = vadd.f32 %v1315_v3, %v1314_v61  ;;  %v1926_v13 = vld [vmem:[#allocation2 + $0xb0] sm:$0xff] }
 0x331   :  { %v1299_v37 = vmul.f32 %v1922_v1, %v2480_v55  ;;  %v1410_v25 = vadd.f32 %v1409_v54, %v1297_v52  ;;  %v1100_v40 = vrot.slane %v1000_v5, %v2221_v58  ;;  %v1160_v48 = vrot.slane %v2480_v55, %v2221_v58  ;;  %v1927_v21 = vld [vmem:[#allocation2 + $0x30] sm:$0xff] }
 0x332   :  { %v1327_v12 = vrot.slane %v1326_v0, 2  ;;  %v1331_v43 = vrot.slane %v1284_v49, 4  ;;  %v1323_v53 = vrot.slane %v1322_v20, 1  ;;  %v1317_v4 = vrot.slane %v1316_v38, 1 }
 0x333   :  { %v1421_v50 = vrot.slane %v1299_v37, 4  ;;  %v1003_v32 = vpop.permute.xlu1 %1002  ;;  %v1411_v11 = vrot.slane %v1410_v25, 2  ;;  %v1215_v27 = vsel %vm693_vm2, %v1100_v40, %v1214_v22 }
 0x334   :  { %v2485_v14 = vpop.permute.xlu0 %1050  ;;  %v1332_v63 = vadd.f32 %v1331_v43, %v1284_v49  ;;  %v1285_v60 = vmul.f32 %v1923_v34, %v1003_v32  ;;  %v1328_v15 = vadd.f32 %v1327_v12, %v1326_v0  ;;  %v1104_v46 = vrot.slane %v1003_v32, %v2221_v58 }
 0x335   :  { %v1422_v2 = vadd.f32 %v1421_v50, %v1299_v37  ;;  %v1301_v10 = vmul.f32 %v1924_v18, %v2485_v14  ;;  %v1412_v26 = vadd.f32 %v1411_v11, %v1410_v25  ;;  %v1324_v61 = vadd.f32 %v1323_v53, %v1322_v20  ;;  %v1928_v50 = vld [vmem:[#allocation2 + $0x48] sm:$0xff] }
 0x336   :  { %v1337_v39 = vrot.slane %v1285_v60, 4  ;;  %v1333_v23 = vrot.slane %v1332_v63, 2  ;;  %v1329_v16 = vrot.slane %v1328_v15, 1  ;;  %v1318_v62 = vadd.f32 %v1317_v4, %v1316_v38 }
 0x337   :  { %v1006_v57 = vpop.permute.xlu1 %1005  ;;  %v1433_v17 = vrot.slane %v1301_v10, 4  ;;  %v1423_v56 = vrot.slane %v1422_v2, 2  ;;  %v1216_v5 = vsel %vm695_vm3, %v1104_v46, %v1215_v27  ;;  %v1413_v49 = vrot.slane %v1412_v26, 1  ;;  %v1930_v27 = vld [vmem:[#allocation2 + $0xc0] sm:$0xff] }
 0x338   :  { %v2492_v45 = vpop.permute.xlu0 %1056  ;;  %v1286_v24 = vmul.f32 %v1925_v28, %v1006_v57  ;;  %v1338_v30 = vadd.f32 %v1337_v39, %v1285_v60  ;;  %v1334_v44 = vadd.f32 %v1333_v23, %v1332_v63  ;;  %v1108_v52 = vrot.slane %v1006_v57, %v2221_v58  ;;  %v1929_v63 = vld [vmem:[#allocation2 + $0x38] sm:$0xff] }
 0x339   :  { %v1434_v41 = vadd.f32 %v1433_v17, %v1301_v10  ;;  %v1303_v36 = vmul.f32 %v1926_v13, %v2492_v45  ;;  %v1330_v6 = vadd.f32 %v1329_v16, %v1328_v15  ;;  %v1424_v25 = vadd.f32 %v1423_v56, %v1422_v2 }
 0x33a   :  { %v1343_v29 = vrot.slane %v1286_v24, 4  ;;  %v1339_v31 = vrot.slane %v1338_v30, 2  ;;  %v1335_v12 = vrot.slane %v1334_v44, 1  ;;  %v1217_v19 = vsel %vm697_vm4, %v1108_v52, %v1216_v5 }
 0x33b   :  { %v1009_v33 = vpop.permute.xlu1 %1008  ;;  %v1435_v1 = vrot.slane %v1434_v41, 2  ;;  %v1445_v43 = vrot.slane %v1303_v36, 4  ;;  %v1537_v11 = vsel %vm689_vm0, %v1324_v61, %v1318_v62  ;;  %v1425_v10 = vrot.slane %v1424_v25, 1 }
 0x33c   :  { %v2500_v35 = vpop.permute.xlu0 %1017  ;;  %v1344_v47 = vadd.f32 %v1343_v29, %v1286_v24  ;;  %v1287_v54 = vmul.f32 %v1927_v21, %v1009_v33  ;;  %v1340_v0 = vadd.f32 %v1339_v31, %v1338_v30  ;;  %v1112_v3 = vrot.slane %v1009_v33, %v2221_v58 }
 0x33d   :  { %v1290_v32 = vmul.f32 %v1928_v50, %v2500_v35  ;;  %v1436_v39 = vadd.f32 %v1435_v1, %v1434_v41  ;;  %v1336_v18 = vadd.f32 %v1335_v12, %v1334_v44  ;;  %v1446_v28 = vadd.f32 %v1445_v43, %v1303_v36  ;;  %v1931_v41 = vld [vmem:[#allocation2 + $0x88] sm:$0xff] }
 0x33e   :  { %v1345_v9 = vrot.slane %v1344_v47, 2  ;;  %v1349_v37 = vrot.slane %v1287_v54, 4  ;;  %v1341_v60 = vrot.slane %v1340_v0, 1  ;;  %v1218_v51 = vsel %vm699_vm5, %v1112_v3, %v1217_v19 }
 0x33f   :  { %v1012_v7 = vpop.permute.xlu1 %1011  ;;  %v1367_v15 = vrot.slane %v1290_v32, 4  ;;  %v1168_v53 = vrot.slane %v2485_v14, %v2221_v58  ;;  %v1538_v17 = vsel %vm691_vm1, %v1330_v6, %v1537_v11  ;;  %v2524_v29 = vadd.f32 %v1413_v49, %v1412_v26  ;;  %v1932_v49 = vld [vmem:[#allocation2 + $0x58] sm:$0xff] }
 0x340   :  { %v2506_v8 = vpop.permute.xlu0 %1062  ;;  %v1346_v20 = vadd.f32 %v1345_v9, %v1344_v47  ;;  %v1116_v38 = vrot.slane %v1012_v7, %v2221_v58  ;;  %v1288_v34 = vmul.f32 %v1929_v63, %v1012_v7  ;;  %v1350_v40 = vadd.f32 %v1349_v37, %v1287_v54 }
 0x341   :  { %v1368_v24 = vadd.f32 %v1367_v15, %v1290_v32  ;;  %v1305_v46 = vmul.f32 %v1930_v27, %v2506_v8  ;;  %v1342_v16 = vadd.f32 %v1341_v60, %v1340_v0  ;;  %v1437_v31 = vrot.slane %v1436_v39, 1 }
 0x342   :  { %v1219_v2 = vsel %vm701_vm6, %v1116_v38, %v1218_v51  ;;  %v1355_v57 = vrot.slane %v1288_v34, 4  ;;  %v1347_v4 = vrot.slane %v1346_v20, 1  ;;  %v1351_v56 = vrot.slane %v1350_v40, 2 }
 0x343   :  { %v1042_v22 = vpop.permute.xlu1 %1041  ;;  %1245 = vst.msk [vmem:[%s2759_s5] sm:$0xff] %vm728_vm7, %v1219_v2  ;;  %v1176_v33 = vrot.slane %v2492_v45, %v2221_v58  ;;  %v1457_v44 = vrot.slane %v1305_v46, 4  ;;  %v1539_v61 = vsel %vm693_vm2, %v1336_v18, %v1538_v17  ;;  %v2533_v62 = vadd.f32 %v1425_v10, %v1424_v25  ;;  %v1933_v25 = vld [vmem:[#allocation2 + $0x98] sm:$0xff] }
 0x344   :  { %v2514_v23 = vpop.permute.xlu0 %1023  ;;  %v1356_v30 = vadd.f32 %v1355_v57, %v1288_v34  ;;  %v1298_v47 = vmul.f32 %v1931_v41, %v1042_v22  ;;  %v1447_v52 = vrot.slane %v1446_v28, 2  ;;  %v1369_v26 = vrot.slane %v1368_v24, 2  ;;  %v1934_v2 = vld [vmem:[#allocation2 + $0xd8] sm:$0xff] }
 0x345   :  { %v1348_v21 = vadd.f32 %v1347_v4, %v1346_v20  ;;  %v1124_v54 = vrot.slane %v2500_v35, %v2221_v58  ;;  %v1540_v9 = vsel %vm695_vm3, %v1342_v16, %v1539_v61  ;;  %v1352_v3 = vadd.f32 %v1351_v56, %v1350_v40  ;;  %v1936_v61 = vld [vmem:[#allocation2 + $0x68] sm:$0xff] }
 0x346   :  { %v1357_v5 = vrot.slane %v1356_v30, 2  ;;  %v1415_v0 = vrot.slane %v1298_v47, 4  ;;  %v1458_v6 = vadd.f32 %v1457_v44, %v1305_v46  ;;  %v1292_v1 = vmul.f32 %v1932_v49, %v2514_v23 }
 0x347   :  { %v2528_v13 = vpop.permute.xlu1 %1047  ;;  %v2539_v37 = vadd.f32 %v1437_v31, %v1436_v39  ;;  %v1156_v7 = vrot.slane %v1042_v22, %v2221_v58  ;;  %v2547_v19 = vadd.f32 %v1447_v52, %v1446_v28  ;;  %v1370_v20 = vadd.f32 %v1369_v26, %v1368_v24  ;;  %v1935_v28 = vld [vmem:[#allocation2 + $0xa8] sm:$0xff] }
 0x348   :  { %v2530_v36 = vpop.permute.xlu0 %1071  ;;  %v1416_v12 = vadd.f32 %v1415_v0, %v1298_v47  ;;  %v1300_v43 = vmul.f32 %v1933_v25, %v2528_v13  ;;  %v1184_v38 = vrot.slane %v2506_v8, %v2221_v58  ;;  %v1379_v63 = vrot.slane %v1292_v1, 4  ;;  %v1937_v0 = vld [vmem:[#allocation2 + $0x40] sm:$0xff] }
 0x349   :  { %v2552_v34 = vsel %vm697_vm4, %v1348_v21, %v1540_v9  ;;  %v1358_v60 = vadd.f32 %v1357_v5, %v1356_v30  ;;  %v1353_v15 = vrot.slane %v1352_v3, 1  ;;  %v1459_v11 = vrot.slane %v1458_v6, 2 }
 0x34a   :  { %v1417_v51 = vrot.slane %v1416_v12, 2  ;;  %v1427_v40 = vrot.slane %v1300_v43, 4  ;;  %v1380_v39 = vadd.f32 %v1379_v63, %v1292_v1  ;;  %v1308_v57 = vmul.f32 %v1934_v2, %v2530_v36 }
 0x34b   :  { %v2543_v50 = vpop.permute.xlu1 %1053  ;;  %v1227_v22 = vsel %vm689_vm0, %v1156_v7, %v1152_v59  ;;  %v1371_v30 = vrot.slane %v1370_v20, 1  ;;  %v1132_v27 = vrot.slane %v2514_v23, %v2221_v58  ;;  %v1164_v46 = vrot.slane %v2528_v13, %v2221_v58 }
 0x34c   :  { %v2545_v32 = vpop.permute.xlu0 %1029  ;;  %v1418_v18 = vadd.f32 %v1417_v51, %v1416_v12  ;;  %v1428_v10 = vadd.f32 %v1427_v40, %v1300_v43  ;;  %v1302_v24 = vmul.f32 %v1935_v28, %v2543_v50  ;;  %v1475_v17 = vrot.slane %v1308_v57, 4 }
 0x34d   :  { %v1359_v16 = vrot.slane %v1358_v60, 1  ;;  %v1381_v56 = vrot.slane %v1380_v39, 2  ;;  %v1460_v59 = vadd.f32 %v1459_v11, %v1458_v6  ;;  %v1294_v52 = vmul.f32 %v1936_v61, %v2545_v32 }
 0x34e   :  { %v1429_v31 = vrot.slane %v1428_v10, 2  ;;  %v1439_v42 = vrot.slane %v1302_v24, 4  ;;  %v1419_v41 = vrot.slane %v1418_v18, 1  ;;  %v1476_v47 = vadd.f32 %v1475_v17, %v1308_v57 }
 0x34f   :  { %v1015_v4 = vpop.permute.xlu1 %1014  ;;  %v2567_v26 = vadd.f32 %v1353_v15, %v1352_v3  ;;  %v2571_v49 = vadd.f32 %v1371_v30, %v1370_v20  ;;  %v1228_v6 = vsel %vm691_vm1, %v1160_v48, %v1227_v22  ;;  %v1391_v7 = vrot.slane %v1294_v52, 4  ;;  %v1938_v22 = vld [vmem:[#allocation2 + $0xe8] sm:$0xff]  ;;  %v1939_v30 = vld [vmem:[#allocation2 + $0x50] sm:$0xff] }
 0x350   :  { %v2564_v44 = vpop.permute.xlu0 %1077  ;;  %v1430_v21 = vadd.f32 %v1429_v31, %v1428_v10  ;;  %v1440_v5 = vadd.f32 %v1439_v42, %v1302_v24  ;;  %v1289_v9 = vmul.f32 %v1937_v0, %v1015_v4  ;;  %v1477_v1 = vrot.slane %v1476_v47, 2 }
 0x351   :  { %v1382_v12 = vadd.f32 %v1381_v56, %v1380_v39  ;;  %v1229_v25 = vsel %vm693_vm2, %v1164_v46, %v1228_v6  ;;  %v1172_v3 = vrot.slane %v2543_v50, %v2221_v58  ;;  %v2580_v63 = vadd.f32 %v1359_v16, %v1358_v60 }
 0x352   :  { %v1361_v43 = vrot.slane %v1289_v9, 4  ;;  %v1461_v51 = vrot.slane %v1460_v59, 1  ;;  %v1420_v40 = vadd.f32 %v1419_v41, %v1418_v18  ;;  %v1196_v20 = vrot.slane %v2530_v36, %v2221_v58  ;;  %v1946_v36 = vld [vmem:[#allocation2 + $0x70] sm:$0xff] }
 0x353   :  { %v2569_v13 = vpop.permute.xlu1 %1020  ;;  %v1431_v15 = vrot.slane %v1430_v21, 1  ;;  %v1441_v55 = vrot.slane %v1440_v5, 2  ;;  %v1392_v11 = vadd.f32 %v1391_v7, %v1294_v52  ;;  %v1478_v57 = vadd.f32 %v1477_v1, %v1476_v47  ;;  %v1940_v52 = vld [vmem:[#allocation2 + $0x78] sm:$0xff]  ;;  %v1941_v7 = vld [vmem:[#allocation2 + $0xc8] sm:$0xff] }
 0x354   :  { %v1362_v48 = vadd.f32 %v1361_v43, %v1289_v9  ;;  %v2584_v2 = vpop.permute.xlu0 %1035  ;;  %v1230_v50 = vsel %vm695_vm3, %v1168_v53, %v1229_v25  ;;  %v1120_v60 = vrot.slane %v1015_v4, %v2221_v58  ;;  %v1310_v18 = vmul.f32 %v1938_v22, %v2564_v44 }
 0x355   :  { %v1383_v10 = vrot.slane %v1382_v12, 1  ;;  %v2595_v28 = vsel %vm697_vm4, %v1172_v3, %v1230_v50  ;;  %v1291_v46 = vmul.f32 %v1939_v30, %v2569_v13  ;;  %v2598_v17 = vadd.f32 %v1461_v51, %v1460_v59 }
 0x356   :  { %v1363_v24 = vrot.slane %v1362_v48, 2  ;;  %v1551_v14 = vsel %vm689_vm0, %v1420_v40, %v2524_v29  ;;  %v1140_v53 = vrot.slane %v2545_v32, %v2221_v58  ;;  %v1487_v4 = vrot.slane %v1310_v18, 4 }
 0x357   :  { %v2586_v39 = vpop.permute.xlu1 %1065  ;;  %v1432_v16 = vadd.f32 %v1431_v15, %v1430_v21  ;;  %v2604_v56 = vadd.f32 %v1441_v55, %v1440_v5  ;;  %v1393_v31 = vrot.slane %v1392_v11, 2  ;;  %v1373_v42 = vrot.slane %v1291_v46, 4  ;;  %v1942_v55 = vld [vmem:[#allocation2 + $0xf8] sm:$0xff] }
 0x358   :  { %v1479_v47 = vrot.slane %v1478_v57, 1  ;;  %v1220_v59 = vsel %vm689_vm0, %v1124_v54, %v1120_v60  ;;  %v1364_v61 = vadd.f32 %v1363_v24, %v1362_v48  ;;  %v1296_v29 = vmul.f32 %v1940_v52, %v2584_v2  ;;  %v2617_v6 = vpop.permute.xlu0 %1083 }
 0x359   :  { %v2611_v0 = vadd.f32 %v1383_v10, %v1382_v12  ;;  %v1552_v21 = vsel %vm691_vm1, %v2533_v62, %v1551_v14  ;;  %v1128_v5 = vrot.slane %v2569_v13, %v2221_v58  ;;  %v1374_v9 = vadd.f32 %v1373_v42, %v1291_v46 }
 0x35a   :  { %v1204_v35 = vrot.slane %v2564_v44, %v2221_v58  ;;  %v1488_v1 = vadd.f32 %v1487_v4, %v1310_v18  ;;  %v1403_v54 = vrot.slane %v1296_v29, 4  ;;  %v1306_v25 = vmul.f32 %v1941_v7, %v2586_v39  ;;  %v1943_v18 = vld [vmem:[#allocation2 + $0xd0] sm:$0xff] }
 0x35b   :  { %v1069_v41 = vpop.permute.xlu1 %1068  ;;  %v2623_v12 = vsel %vm693_vm2, %v1432_v16, %v1552_v21  ;;  %v1443_v3 = vrot.slane %v2604_v56, 1  ;;  %v2626_v62 = vadd.f32 %v1393_v31, %v1392_v11  ;;  %v1375_v43 = vrot.slane %v1374_v9, 2 }
 0x35c   :  { %v2628_v51 = vadd.f32 %v1479_v47, %v1478_v57  ;;  %v1365_v40 = vrot.slane %v1364_v61, 1  ;;  %v1463_v15 = vrot.slane %v1306_v25, 4  ;;  %v1312_v48 = vmul.f32 %v1942_v55, %v2617_v6 }
 0x35d   :  { %v1221_v50 = vsel %vm691_vm1, %v1128_v5, %v1220_v59  ;;  %v1376_v60 = vadd.f32 %v1375_v43, %v1374_v9  ;;  %v1188_v22 = vrot.slane %v2586_v39, %v2221_v58  ;;  %v1307_v10 = vmul.f32 %v1943_v18, %v1069_v41  ;;  %v1944_v5 = vld [vmem:[#allocation2 + $0x60] sm:$0xff] }
 0x35e   :  { %v1489_v24 = vrot.slane %v1488_v1, 2  ;;  %v1404_v11 = vadd.f32 %v1403_v54, %v1296_v29  ;;  %v1464_v30 = vadd.f32 %v1463_v15, %v1306_v25  ;;  %v1499_v46 = vrot.slane %v1312_v48, 4 }
 0x35f   :  { %v1027_v13 = vpop.permute.xlu1 %1026  ;;  %v1395_v57 = vrot.slane %v2626_v62, 1  ;;  %v1148_v14 = vrot.slane %v2584_v2, %v2221_v58  ;;  %v1192_v4 = vrot.slane %v1069_v41, %v2221_v58  ;;  %v1469_v16 = vrot.slane %v1307_v10, 4 }
 0x360   :  { %v1366_v42 = vadd.f32 %v1365_v40, %v1364_v61  ;;  %v1377_v47 = vrot.slane %v1376_v60, 1  ;;  %v1465_v59 = vrot.slane %v1464_v30, 2  ;;  %v1136_v39 = vrot.slane %v1027_v13, %v2221_v58 }
 0x361   :  { %v1234_v52 = vsel %vm689_vm0, %v1188_v22, %v1184_v38  ;;  %v1500_v29 = vadd.f32 %v1499_v46, %v1312_v48  ;;  %v1470_v21 = vadd.f32 %v1469_v16, %v1307_v10  ;;  %v1293_v9 = vmul.f32 %v1944_v5, %v1027_v13  ;;  %v1945_v22 = vld [vmem:[#allocation2 + $0xe0] sm:$0xff] }
 0x362   :  { %v2643_v54 = vadd.f32 %v1489_v24, %v1488_v1  ;;  %v1405_v2 = vrot.slane %v1404_v11, 2  ;;  %v1466_v41 = vadd.f32 %v1465_v59, %v1464_v30  ;;  %v1212_v61 = vrot.slane %v2617_v6, %v2221_v58 }
 0x363   :  { %v1075_v31 = vpop.permute.xlu1 %1074  ;;  %v1235_v7 = vsel %vm691_vm1, %v1192_v4, %v1234_v52  ;;  %v1471_v25 = vrot.slane %v1470_v21, 2  ;;  %v1222_v8 = vsel %vm693_vm2, %v1132_v27, %v1221_v50  ;;  %v1385_v38 = vrot.slane %v1293_v9, 4  ;;  %v1947_v52 = vld [vmem:[#allocation2 + $0xf0] sm:$0xff] }
 0x364   :  { %v1544_v13 = vsel %vm689_vm0, %v2571_v49, %v1366_v42  ;;  %v1378_v1 = vadd.f32 %v1377_v47, %v1376_v60  ;;  %v1223_v40 = vsel %vm695_vm3, %v1136_v39, %v1222_v8  ;;  %v1200_v15 = vrot.slane %v1075_v31, %v2221_v58 }
 0x365   :  { %v1501_v55 = vrot.slane %v1500_v29, 2  ;;  %v1472_v6 = vadd.f32 %v1471_v25, %v1470_v21  ;;  %v1386_v48 = vadd.f32 %v1385_v38, %v1293_v9  ;;  %v1309_v18 = vmul.f32 %v1945_v22, %v1075_v31 }
 0x366   :  { %v2656_v10 = vadd.f32 %v1405_v2, %v1404_v11  ;;  %v1467_v23 = vrot.slane %v1466_v41, 1  ;;  %v1236_v27 = vsel %vm693_vm2, %v1196_v20, %v1235_v7  ;;  %v1224_v30 = vsel %vm697_vm4, %v1140_v53, %v1223_v40  ;;  %v1948_v40 = vld [vmem:[#allocation2 + $0xb8] sm:$0xff] }
 0x367   :  { %v1033_v43 = vpop.permute.xlu1 %1032  ;;  %v1473_v50 = vrot.slane %v1472_v6, 1  ;;  %v1387_v60 = vrot.slane %v1386_v48, 2  ;;  %v1481_v24 = vrot.slane %v1309_v18, 4  ;;  %v1545_v11 = vsel %vm691_vm1, %v1378_v1, %v1544_v13 }
 0x368   :  { %v1144_v49 = vrot.slane %v1033_v43, %v2221_v58  ;;  %v1237_v4 = vsel %vm695_vm3, %v1200_v15, %v1236_v27  ;;  %v1295_v31 = vmul.f32 %v1946_v36, %v1033_v43  ;;  %v2670_v20 = vadd.f32 %v1501_v55, %v1500_v29 }
 0x369   :  { %v1388_v42 = vadd.f32 %v1387_v60, %v1386_v48  ;;  %v1482_v47 = vadd.f32 %v1481_v24, %v1309_v18  ;;  %v1468_v39 = vadd.f32 %v1467_v23, %v1466_v41  ;;  %v1474_v5 = vadd.f32 %v1473_v50, %v1472_v6 }
 0x36a   :  { %v1225_v16 = vsel %vm699_vm5, %v1144_v49, %v1224_v30  ;;  %v1397_v32 = vrot.slane %v1295_v31, 4  ;;  %v1238_v29 = vsel %vm697_vm4, %v1204_v35, %v1237_v4  ;;  %v1232_v8 = vsel %vm699_vm5, %v1176_v33, %v2595_v28 }
 0x36b   :  { %v1081_v46 = vpop.permute.xlu1 %1080  ;;  %v1226_v59 = vsel %vm701_vm6, %v1148_v14, %v1225_v16  ;;  %v1389_v9 = vrot.slane %v1388_v42, 1  ;;  %v1483_v2 = vrot.slane %v1482_v47, 2  ;;  %v1542_v45 = vsel %vm699_vm5, %v2567_v26, %v2552_v34 }
 0x36c   :  { %1246 = vst.msk [vmem:[%s2759_s5 + $0x8] sm:$0xff] %vm728_vm7, %v1226_v59  ;;  %v1208_v53 = vrot.slane %v1081_v46, %v2221_v58  ;;  %v1311_v21 = vmul.f32 %v1947_v52, %v1081_v46  ;;  %v1398_v41 = vadd.f32 %v1397_v32, %v1295_v31  ;;  %v1558_v33 = vsel %vm689_vm0, %v1468_v39, %v2598_v17 }
 0x36d   :  { %v1390_v38 = vadd.f32 %v1389_v9, %v1388_v42  ;;  %v1484_v43 = vadd.f32 %v1483_v2, %v1482_v47  ;;  %v1559_v55 = vsel %vm691_vm1, %v1474_v5, %v1558_v33  ;;  %v1491_v34 = vrot.slane %v2643_v54, 1 }
 0x36e   :  { %v1239_v7 = vsel %vm699_vm5, %v1208_v53, %v1238_v29  ;;  %v1493_v25 = vrot.slane %v1311_v21, 4  ;;  %v1399_v44 = vrot.slane %v1398_v41, 2  ;;  %v1407_v26 = vrot.slane %v2656_v10, 1 }
 0x36f   :  { %v1060_v14 = vpop.permute.xlu1 %1059  ;;  %v1240_v13 = vsel %vm701_vm6, %v1212_v61, %v1239_v7  ;;  %v1485_v28 = vrot.slane %v1484_v43, 1  ;;  %v1546_v17 = vsel %vm693_vm2, %v2611_v0, %v1545_v11  ;;  %v1444_v50 = vadd.f32 %v1443_v3, %v2604_v56 }
 0x370   :  { %v1180_v1 = vrot.slane %v1060_v14, %v2221_v58  ;;  %1248 = vst.msk [vmem:[%s2759_s5 + $0x18] sm:$0xff] %vm728_vm7, %v1240_v13  ;;  %v1494_v35 = vadd.f32 %v1493_v25, %v1311_v21  ;;  %v1304_v15 = vmul.f32 %v1948_v40, %v1060_v14  ;;  %v1543_v58 = vsel %vm701_vm6, %v2580_v63, %v1542_v45 }
 0x371   :  { %v1400_v6 = vadd.f32 %v1399_v44, %v1398_v41  ;;  %1569 = vst [vmem:[#allocation7] sm:$0xff] %v1543_v58  ;;  %v1486_v18 = vadd.f32 %v1485_v28, %v1484_v43  ;;  %v1547_v63 = vsel %vm695_vm3, %v1390_v38, %v1546_v17  ;;  %v1396_v60 = vadd.f32 %v1395_v57, %v2626_v62 }
 0x372   :  { %v1233_v61 = vsel %vm701_vm6, %v1180_v1, %v1232_v8  ;;  %v1495_v48 = vrot.slane %v1494_v35, 2  ;;  %v1451_v22 = vrot.slane %v1304_v15, 4  ;;  %v1503_v24 = vrot.slane %v2670_v20, 1 }
 0x373   :  { %1247 = vst.msk [vmem:[%s2759_s5 + $0x10] sm:$0xff] %vm728_vm7, %v1233_v61  ;;  %v1401_v23 = vrot.slane %v1400_v6, 1  ;;  %v1560_v30 = vsel %vm693_vm2, %v2628_v51, %v1559_v55  ;;  %v1449_v16 = vrot.slane %v2547_v19, 1  ;;  %v1492_v36 = vadd.f32 %v1491_v34, %v2643_v54  ;;  %s2026_s5 = smov [#allocation7]  }
 0x374   :  { %v1496_v27 = vadd.f32 %v1495_v48, %v1494_v35  ;;  %v1452_v49 = vadd.f32 %v1451_v22, %v1304_v15  ;;  %v1561_v0 = vsel %vm695_vm3, %v1486_v18, %v1560_v30  ;;  %v1408_v56 = vadd.f32 %v1407_v26, %v2656_v10  ;;  %s1578_s27 = sshll.u32 %s2026_s5, 4  ;;  %s1579_s27 = int_to_ptr.vmem [resolvable:$true] %s1578_s27 }
 0x375   :  { %v1402_v46 = vadd.f32 %v1401_v23, %v1400_v6  ;;  %v1548_v3 = vsel %vm697_vm4, %v1396_v60, %v1547_v63  ;;  %v1554_v51 = vsel %vm695_vm3, %v2539_v37, %v2623_v12  ;;  %v1504_v42 = vadd.f32 %v1503_v24, %v2670_v20  ;;  %s1993_s30 = scalar_lea.vmem %s1579_s27, 512  ;;  %p1998_p3 = scmp.lt.s32.totalorder %s1579_s27, %s1579_s27 }
 0x376   :  { %v1497_v11 = vrot.slane %v1496_v27, 1  ;;  %v1453_v4 = vrot.slane %v1452_v49, 2  ;;  %v1562_v59 = vsel %vm697_vm4, %v1492_v36, %v1561_v0  ;;  %v1555_v54 = vsel %vm697_vm4, %v1444_v50, %v1554_v51  ;;  %p1994_p2 = scmp.ne.s32.totalorder %s1579_s27, %s1993_s30  ;;  %p1999_p4 = scmp.lt.s32.totalorder %s1993_s30, %s1993_s30 }
 0x377   :  { %v1549_v57 = vsel %vm699_vm5, %v1402_v46, %v1548_v3  ;;  %v1450_v32 = vadd.f32 %v1449_v16, %v2547_v19 }
 0x378   :  { %v1498_v31 = vadd.f32 %v1497_v11, %v1496_v27  ;;  %v1454_v62 = vadd.f32 %v1453_v4, %v1452_v49  ;;  %v1550_v47 = vsel %vm701_vm6, %v1408_v56, %v1549_v57  ;;  %p2000_p5 = por %p1999_p4, %p1998_p3 }
 0x379   :  { %1570 = vst [vmem:[#allocation7 + $0x8] sm:$0xff] %v1550_v47  ;;  %v1556_v37 = vsel %vm699_vm5, %v1450_v32, %v1555_v54 }
 0x37a   :  { %v1455_v39 = vrot.slane %v1454_v62, 1  ;;  %v1563_v10 = vsel %vm699_vm5, %v1498_v31, %v1562_v59  ;;  %p2001_p6 = pnand %p2000_p5, %p1994_p2 }
 0x37b   :  { %v1564_v53 = vsel %vm701_vm6, %v1504_v42, %v1563_v10 }
 0x37c   :  { %v1456_v52 = vadd.f32 %v1455_v39, %v1454_v62  ;;  %1572 = vst [vmem:[#allocation7 + $0x18] sm:$0xff] %v1564_v53 }
 0x37e   :  { %v1557_v12 = vsel %vm701_vm6, %v1456_v52, %v1556_v37 }
 0x37f   :  { %1571 = vst [vmem:[#allocation7 + $0x10] sm:$0xff] %v1557_v12 }
 0x380   :  { %2004 = shalt.err (!%p2001_p6)
}
 0x381   :  { %s2005_s8 = scalar_lea.hbm %s2758_s4, 512 }
 0x382   :  { %p2006_p7 = scmp.ne.s32.totalorder %s2758_s4, %s2005_s8  ;;  %p2009_p8 = scmp.lt.u32.totalorder %s2005_s8, %s2758_s4 }
 0x384   :  { %p2011_p9 = pnand %p2009_p8, %p2006_p7 }
 0x386   :  { %2014 = shalt.err (!%p2011_p9)
}
 0x387   :  { %1584 = dma.vmem_to_hbm [thread:$0]  %s1579_s27, 512, %s2758_s4, [#allocation4], %s2022_s28, %s2022_s28, %s2023_s29  }
 0x388   :  { %2019 = dma.done.wait [#allocation4], 512  }
 0x389   :  { %2020 = vsyncadd [#allocation4], 4294966784 }
 0x38a   :  { %1592 = vsyncpa [#allocation3], 1 }
 0x38b   :  { %1593 = vsyncpa [#allocation6], 1 }
 0x38c   :  { %1594 = vsyncpa [#allocation4], 1 }

</bundles_post_ra>
